<compile_context>
chip_gen: v7x
topology: tpu7x:2x2x1
jax: 0.10.0
libtpu: 0.0.40
codegen_flags: <defaults>
</compile_context>

<pallas_src>
import math

import jax
import jax.numpy as jnp
from jax.experimental import pallas as pl
from jax.experimental.pallas import tpu as pltpu


# ---------------------------------------------------------------------------
# Fused kernel: conv stack + FC head, one (or a few) samples per grid step.
# ---------------------------------------------------------------------------
def cnn_fused_kernel(x_ref,
                     w1_ref, b1_ref, s1_ref,
                     w2_ref, b2_ref, s2_ref,
                     w3_ref, b3_ref, s3_ref,
                     wcat_ref, fmask_ref, ffold_ref, fb1_ref,
                     fw2_ref, fb2_ref,
                     o_ref):
    def conv_relu_pool(x, w_ref, b_ref, s_ref):
        # x: (C_in, L_in)  w_ref: (K, C_out, C_in)  b_ref: (C_out, 1)
        # s_ref: (L_out - 1, L_out // 2) 0/1 even-position selection matrix.
        K = w_ref.shape[0]
        L_out = x.shape[1] - K + 1
        acc = jnp.dot(w_ref[0], x[:, 0:L_out], preferred_element_type=jnp.float32)
        for k in range(1, K):                    # static unroll over the 5 taps
            acc = acc + jnp.dot(w_ref[k], x[:, k:k + L_out],
                                preferred_element_type=jnp.float32)
        y = jnp.maximum(acc + b_ref[...], 0.0)   # bias + ReLU, (C_out, L_out)
        # MaxPool1d(2): neighbour max (static lane shift) then pick even cols
        # with a half-width 0/1 selection matmul — exact, half the MXU work.
        m = jnp.maximum(y[:, 0:L_out - 1], y[:, 1:L_out])      # (C_out, L_out-1)
        return jnp.dot(m, s_ref[...], preferred_element_type=jnp.float32)

    fmask = fmask_ref[...]                       # (gsz, gsz*H) block-diag mask
    ffold = ffold_ref[...]                       # (gsz*H, H) fold matrix
    groups = wcat_ref.shape[0]
    gsz = fmask.shape[0]

    for s in range(x_ref.shape[0]):              # static batch-block loop
        x = x_ref[s].astype(jnp.float32)                        # (C_in, 292)
        p1 = conv_relu_pool(x,  w1_ref, b1_ref, s1_ref)         # (16, 144)
        p2 = conv_relu_pool(p1, w2_ref, b2_ref, s2_ref)         # (32, 70)
        p3 = conv_relu_pool(p2, w3_ref, b3_ref, s3_ref)         # (64, 33)

        # FC1 (Linear 2112->32) without flatten: per channel-group matmul
        # against concatenated per-channel weights, block-diagonal select,
        # sublane-sum and lane fold.  Exact f32 (only summation order differs).
        acc = jnp.zeros((1, fmask.shape[1]), jnp.float32)       # (1, 256)
        for g in range(groups):
            hg = jnp.dot(p3[g * gsz:(g + 1) * gsz, :], wcat_ref[g],
                         preferred_element_type=jnp.float32)    # (8, 256)
            acc = acc + jnp.sum(hg * fmask, axis=0, keepdims=True)
        h = jnp.dot(acc, ffold, preferred_element_type=jnp.float32) + fb1_ref[...]
        h = jnp.maximum(h, 0.0)                                  # (1, 32)
        # TODO(synk): nn.Dropout(0.1) is identity in eval mode; no RNG applied.
        logits = (jnp.dot(h, fw2_ref[...], preferred_element_type=jnp.float32)
                  + fb2_ref[...])                                # (1, 2)
        mx = jnp.max(logits, axis=1, keepdims=True)
        e = jnp.exp(logits - mx)
        o_ref[s] = e / jnp.sum(e, axis=1, keepdims=True)         # Softmax(dim=1)


# ---------------------------------------------------------------------------
# Host-side constant builders
# ---------------------------------------------------------------------------
def _pool_select(L_out):
    """(L_out-1, L_out//2) 0/1 matrix: m @ S picks the even columns of m."""
    L_pool = L_out // 2
    r = jnp.arange(L_out - 1)[:, None]
    c = jnp.arange(L_pool)[None, :]
    return (r == 2 * c).astype(jnp.float32)


def _fc1_block_constants(fw1, c_out, l_pool, groups):
    """Constants for the flatten-free FC1: wcat (G, L, gsz*H), mask, fold."""
    g_size = c_out // groups
    n_hidden = fw1.shape[1]
    w_clj = fw1.reshape(c_out, l_pool, n_hidden)                 # [c, l, j]
    wcat = (w_clj.reshape(groups, g_size, l_pool, n_hidden)
                 .transpose(0, 2, 1, 3)
                 .reshape(groups, l_pool, g_size * n_hidden))    # (G, 33, 256)
    k = jnp.arange(g_size * n_hidden)
    fmask = (jnp.arange(g_size)[:, None] == (k // n_hidden)[None, :]
             ).astype(jnp.float32)                               # (8, 256)
    ffold = ((k[:, None] % n_hidden) == jnp.arange(n_hidden)[None, :]
             ).astype(jnp.float32)                               # (256, 32)
    return wcat, fmask, ffold


def _pick_batch_block(B):
    # Keep >= 2 grid steps so v7x's two TensorCores both get work.
    for bb in (8, 4, 2):
        if B % bb == 0 and B // bb >= 2:
            return bb
    return 1


# ---------------------------------------------------------------------------
# Forward wrapper (single pallas_call)
# ---------------------------------------------------------------------------
def cnn_test_forward(params, x_ncw):
    # x_ncw: (B, C, L) — PyTorch NCW layout, used directly (channels-first).
    x = x_ncw.astype(jnp.float32)
    B, C_in, L = x.shape
    w1, b1 = params["w1"], params["b1"]
    w2, b2 = params["w2"], params["b2"]
    w3, b3 = params["w3"], params["b3"]
    K = w1.shape[0]
    C1, C2, C3 = w1.shape[1], w2.shape[1], w3.shape[1]
    L1 = L - K + 1                      # 288
    assert L1 % 2 == 0, "MaxPool1d(2) stage 1 needs even length"
    L2 = L1 // 2 - K + 1                # 140
    assert L2 % 2 == 0, "MaxPool1d(2) stage 2 needs even length"
    L3 = L2 // 2 - K + 1                # 66
    assert L3 % 2 == 0, "MaxPool1d(2) stage 3 needs even length"
    L3p = L3 // 2                       # 33
    assert C3 * L3p == params["fw1"].shape[0], "Linear(2112, 32) size mismatch"
    H = params["fw1"].shape[1]          # 32
    O = params["fw2"].shape[1]          # 2

    s1, s2, s3 = _pool_select(L1), _pool_select(L2), _pool_select(L3)
    groups = 8
    gsz = C3 // groups
    wcat, fmask, ffold = _fc1_block_constants(params["fw1"], C3, L3p, groups)

    bb = _pick_batch_block(B)

    def full(*shape):
        return pl.BlockSpec(shape, lambda i: (0,) * len(shape))

    out = pl.pallas_call(
        cnn_fused_kernel,
        out_shape=jax.ShapeDtypeStruct((B, 1, O), jnp.float32),
        grid=(B // bb,),
        in_specs=[
            pl.BlockSpec((bb, C_in, L), lambda i: (i, 0, 0)),
            full(K, C1, C_in), full(C1, 1), full(L1 - 1, L1 // 2),
            full(K, C2, C1),   full(C2, 1), full(L2 - 1, L2 // 2),
            full(K, C3, C2),   full(C3, 1), full(L3 - 1, L3 // 2),
            full(groups, L3p, gsz * H), full(gsz, gsz * H),
            full(gsz * H, H), full(1, H),
            full(H, O), full(1, O),
        ],
        out_specs=pl.BlockSpec((bb, 1, O), lambda i: (i, 0, 0)),
        compiler_params=pltpu.CompilerParams(
            dimension_semantics=("parallel",)),
    )(x, w1, b1, s1, w2, b2, s2, w3, b3, s3,
      wcat, fmask, ffold, params["fb1"], params["fw2"], params["fb2"])
    return out.reshape(B, O)


# ---------------------------------------------------------------------------
# Parameters (deterministic, PyTorch-like uniform fan-in init)
# ---------------------------------------------------------------------------
def init_params(key, feat_size):
    ks = jax.random.split(key, 10)

    def u(k, shape, fan_in):
        bound = 1.0 / math.sqrt(fan_in)
        return jax.random.uniform(k, shape, jnp.float32, -bound, bound)

    p = {}
    # Conv1d(feat_size, 16, 5): stored (K, C_out, C_in) = W_pt.permute(2,0,1)
    p["w1"] = u(ks[0], (5, 16, feat_size), feat_size * 5)
    p["b1"] = u(ks[1], (16, 1), feat_size * 5)
    # Conv1d(16, 32, 5)
    p["w2"] = u(ks[2], (5, 32, 16), 16 * 5)
    p["b2"] = u(ks[3], (32, 1), 16 * 5)
    # Conv1d(32, 64, 5)
    p["w3"] = u(ks[4], (5, 64, 32), 32 * 5)
    p["b3"] = u(ks[5], (64, 1), 32 * 5)
    # Linear(2112, 32): stored as W_pt.T
    p["fw1"] = u(ks[6], (2112, 32), 2112)
    p["fb1"] = u(ks[7], (1, 32), 2112)
    # Linear(32, 2)
    p["fw2"] = u(ks[8], (32, 2), 32)
    p["fb2"] = u(ks[9], (1, 2), 32)
    return p


# ---------------------------------------------------------------------------
# Pure-JAX reference (f32-exact matmuls, correctness sanity check)
# ---------------------------------------------------------------------------
def ref_forward(params, x_ncw):
    P = jax.lax.Precision.HIGHEST

    def crp(x, w, b):
        K = w.shape[0]
        C_out = w.shape[1]
        L_out = x.shape[2] - K + 1
        acc = jnp.zeros((x.shape[0], C_out, L_out), jnp.float32)
        for k in range(K):
            acc = acc + jnp.einsum("oc,bcl->bol", w[k], x[:, :, k:k + L_out],
                                   precision=P)
        acc = jnp.maximum(acc + b[None], 0.0)
        Lp = L_out // 2
        return jnp.max(acc[:, :, :2 * Lp].reshape(x.shape[0], C_out, Lp, 2),
                       axis=3)

    h = crp(x_ncw.astype(jnp.float32), params["w1"], params["b1"])
    h = crp(h, params["w2"], params["b2"])
    h = crp(h, params["w3"], params["b3"])
    hf = h.reshape(h.shape[0], -1)
    z = jnp.maximum(jnp.dot(hf, params["fw1"], precision=P) + params["fb1"], 0.0)
    logits = jnp.dot(z, params["fw2"], precision=P) + params["fb2"]
    return jax.nn.softmax(logits, axis=1)


if __name__ == "__main__":
    key = jax.random.PRNGKey(0)
    kp, kx = jax.random.split(key)

    feat_size = 4     # e.g. one-hot DNA (kmer=1)
    B, L = 2, 292     # L=292 -> final conv output (B, 64, 33) -> 2112 features

    params = init_params(kp, feat_size)
    x = jax.random.normal(kx, (B, feat_size, L), jnp.float32)

    fwd = jax.jit(cnn_test_forward)
    y = jax.block_until_ready(fwd(params, x))

    y_ref = ref_forward(params, x)
    assert y.shape == (B, 2), y.shape
    assert bool(jnp.allclose(y, y_ref, atol=1e-5)), (y, y_ref)
    assert bool(jnp.allclose(jnp.sum(y, axis=1), 1.0, atol=1e-5))

    print("KERNEL_OK")
</pallas_src>

<mosaic_0001>
module attributes {stable_mosaic.version = 11 : i64} {
  func.func @cnn_fused_kernel(%arg0: i32, %arg1: memref<1x4x292xf32, #tpu.memory_space<vmem>>, %arg2: memref<5x16x4xf32, #tpu.memory_space<vmem>>, %arg3: memref<16x1xf32, #tpu.memory_space<vmem>>, %arg4: memref<287x144xf32, #tpu.memory_space<vmem>>, %arg5: memref<5x32x16xf32, #tpu.memory_space<vmem>>, %arg6: memref<32x1xf32, #tpu.memory_space<vmem>>, %arg7: memref<139x70xf32, #tpu.memory_space<vmem>>, %arg8: memref<5x64x32xf32, #tpu.memory_space<vmem>>, %arg9: memref<64x1xf32, #tpu.memory_space<vmem>>, %arg10: memref<65x33xf32, #tpu.memory_space<vmem>>, %arg11: memref<8x33x256xf32, #tpu.memory_space<vmem>>, %arg12: memref<8x256xf32, #tpu.memory_space<vmem>>, %arg13: memref<256x32xf32, #tpu.memory_space<vmem>>, %arg14: memref<1x32xf32, #tpu.memory_space<vmem>>, %arg15: memref<32x2xf32, #tpu.memory_space<vmem>>, %arg16: memref<1x2xf32, #tpu.memory_space<vmem>>, %arg17: memref<1x1x2xf32, #tpu.memory_space<vmem>>) attributes {dimension_semantics = [#tpu.dimension_semantics<parallel>], iteration_bounds = array<i64: 2>, scalar_prefetch = 0 : i64, scratch_operands = 0 : i64, tpu.core_type = #tpu.core_type<tc>, window_params = [{transform_indices = @transform_0, window_bounds = array<i64: 1, 4, 292>}, {pipeline_mode = #tpu.pipeline_mode<synchronous>, transform_indices = @transform_1, window_bounds = array<i64: 5, 16, 4>}, {pipeline_mode = #tpu.pipeline_mode<synchronous>, transform_indices = @transform_2, window_bounds = array<i64: 16, 1>}, {pipeline_mode = #tpu.pipeline_mode<synchronous>, transform_indices = @transform_3, window_bounds = array<i64: 287, 144>}, {pipeline_mode = #tpu.pipeline_mode<synchronous>, transform_indices = @transform_4, window_bounds = array<i64: 5, 32, 16>}, {pipeline_mode = #tpu.pipeline_mode<synchronous>, transform_indices = @transform_5, window_bounds = array<i64: 32, 1>}, {pipeline_mode = #tpu.pipeline_mode<synchronous>, transform_indices = @transform_6, window_bounds = array<i64: 139, 70>}, {pipeline_mode = #tpu.pipeline_mode<synchronous>, transform_indices = @transform_7, window_bounds = array<i64: 5, 64, 32>}, {pipeline_mode = #tpu.pipeline_mode<synchronous>, transform_indices = @transform_8, window_bounds = array<i64: 64, 1>}, {pipeline_mode = #tpu.pipeline_mode<synchronous>, transform_indices = @transform_9, window_bounds = array<i64: 65, 33>}, {pipeline_mode = #tpu.pipeline_mode<synchronous>, transform_indices = @transform_10, window_bounds = array<i64: 8, 33, 256>}, {pipeline_mode = #tpu.pipeline_mode<synchronous>, transform_indices = @transform_11, window_bounds = array<i64: 8, 256>}, {pipeline_mode = #tpu.pipeline_mode<synchronous>, transform_indices = @transform_12, window_bounds = array<i64: 256, 32>}, {pipeline_mode = #tpu.pipeline_mode<synchronous>, transform_indices = @transform_13, window_bounds = array<i64: 1, 32>}, {pipeline_mode = #tpu.pipeline_mode<synchronous>, transform_indices = @transform_14, window_bounds = array<i64: 32, 2>}, {pipeline_mode = #tpu.pipeline_mode<synchronous>, transform_indices = @transform_15, window_bounds = array<i64: 1, 2>}, {transform_indices = @transform_16, window_bounds = array<i64: 1, 1, 2>}]} {
    %c0 = arith.constant 0 : index
    %c0_0 = arith.constant 0 : index
    %0 = vector.load %arg12[%c0, %c0_0] : memref<8x256xf32, #tpu.memory_space<vmem>>, vector<8x256xf32>
    %c0_1 = arith.constant 0 : index
    %c0_2 = arith.constant 0 : index
    %1 = vector.load %arg13[%c0_1, %c0_2] : memref<256x32xf32, #tpu.memory_space<vmem>>, vector<256x32xf32>
    %c0_3 = arith.constant 0 : index
    %c0_4 = arith.constant 0 : index
    %c0_5 = arith.constant 0 : index
    %2 = vector.load %arg1[%c0_3, %c0_4, %c0_5] : memref<1x4x292xf32, #tpu.memory_space<vmem>>, vector<1x4x292xf32>
    %3 = vector.shape_cast %2 : vector<1x4x292xf32> to vector<4x292xf32>
    %c0_6 = arith.constant 0 : index
    %c0_7 = arith.constant 0 : index
    %c0_8 = arith.constant 0 : index
    %4 = vector.load %arg2[%c0_6, %c0_7, %c0_8] : memref<5x16x4xf32, #tpu.memory_space<vmem>>, vector<1x16x4xf32>
    %5 = vector.shape_cast %4 : vector<1x16x4xf32> to vector<16x4xf32>
    %6 = vector.extract_strided_slice %3 {offsets = [0, 0], sizes = [4, 288], strides = [1, 1]} : vector<4x292xf32> to vector<4x288xf32>
    %cst = arith.constant dense<0.000000e+00> : vector<16x288xf32>
    %7 = tpu.matmul %5, %6, %cst {dimension_numbers = #tpu.dot_dimension_numbers<[1], [0], [0], [1], [0, 0, 1, 1], [], []>} : vector<16x4xf32>, vector<4x288xf32>, vector<16x288xf32> -> vector<16x288xf32>
    %c1 = arith.constant 1 : index
    %c0_9 = arith.constant 0 : index
    %c0_10 = arith.constant 0 : index
    %8 = vector.load %arg2[%c1, %c0_9, %c0_10] : memref<5x16x4xf32, #tpu.memory_space<vmem>>, vector<1x16x4xf32>
    %9 = vector.shape_cast %8 : vector<1x16x4xf32> to vector<16x4xf32>
    %10 = vector.extract_strided_slice %3 {offsets = [0, 1], sizes = [4, 288], strides = [1, 1]} : vector<4x292xf32> to vector<4x288xf32>
    %cst_11 = arith.constant dense<0.000000e+00> : vector<16x288xf32>
    %11 = tpu.matmul %9, %10, %cst_11 {dimension_numbers = #tpu.dot_dimension_numbers<[1], [0], [0], [1], [0, 0, 1, 1], [], []>} : vector<16x4xf32>, vector<4x288xf32>, vector<16x288xf32> -> vector<16x288xf32>
    %12 = arith.addf %7, %11 : vector<16x288xf32>
    %c2 = arith.constant 2 : index
    %c0_12 = arith.constant 0 : index
    %c0_13 = arith.constant 0 : index
    %13 = vector.load %arg2[%c2, %c0_12, %c0_13] : memref<5x16x4xf32, #tpu.memory_space<vmem>>, vector<1x16x4xf32>
    %14 = vector.shape_cast %13 : vector<1x16x4xf32> to vector<16x4xf32>
    %15 = vector.extract_strided_slice %3 {offsets = [0, 2], sizes = [4, 288], strides = [1, 1]} : vector<4x292xf32> to vector<4x288xf32>
    %cst_14 = arith.constant dense<0.000000e+00> : vector<16x288xf32>
    %16 = tpu.matmul %14, %15, %cst_14 {dimension_numbers = #tpu.dot_dimension_numbers<[1], [0], [0], [1], [0, 0, 1, 1], [], []>} : vector<16x4xf32>, vector<4x288xf32>, vector<16x288xf32> -> vector<16x288xf32>
    %17 = arith.addf %12, %16 : vector<16x288xf32>
    %c3 = arith.constant 3 : index
    %c0_15 = arith.constant 0 : index
    %c0_16 = arith.constant 0 : index
    %18 = vector.load %arg2[%c3, %c0_15, %c0_16] : memref<5x16x4xf32, #tpu.memory_space<vmem>>, vector<1x16x4xf32>
    %19 = vector.shape_cast %18 : vector<1x16x4xf32> to vector<16x4xf32>
    %20 = vector.extract_strided_slice %3 {offsets = [0, 3], sizes = [4, 288], strides = [1, 1]} : vector<4x292xf32> to vector<4x288xf32>
    %cst_17 = arith.constant dense<0.000000e+00> : vector<16x288xf32>
    %21 = tpu.matmul %19, %20, %cst_17 {dimension_numbers = #tpu.dot_dimension_numbers<[1], [0], [0], [1], [0, 0, 1, 1], [], []>} : vector<16x4xf32>, vector<4x288xf32>, vector<16x288xf32> -> vector<16x288xf32>
    %22 = arith.addf %17, %21 : vector<16x288xf32>
    %c4 = arith.constant 4 : index
    %c0_18 = arith.constant 0 : index
    %c0_19 = arith.constant 0 : index
    %23 = vector.load %arg2[%c4, %c0_18, %c0_19] : memref<5x16x4xf32, #tpu.memory_space<vmem>>, vector<1x16x4xf32>
    %24 = vector.shape_cast %23 : vector<1x16x4xf32> to vector<16x4xf32>
    %25 = vector.extract_strided_slice %3 {offsets = [0, 4], sizes = [4, 288], strides = [1, 1]} : vector<4x292xf32> to vector<4x288xf32>
    %cst_20 = arith.constant dense<0.000000e+00> : vector<16x288xf32>
    %26 = tpu.matmul %24, %25, %cst_20 {dimension_numbers = #tpu.dot_dimension_numbers<[1], [0], [0], [1], [0, 0, 1, 1], [], []>} : vector<16x4xf32>, vector<4x288xf32>, vector<16x288xf32> -> vector<16x288xf32>
    %27 = arith.addf %22, %26 : vector<16x288xf32>
    %c0_21 = arith.constant 0 : index
    %c0_22 = arith.constant 0 : index
    %28 = vector.load %arg3[%c0_21, %c0_22] : memref<16x1xf32, #tpu.memory_space<vmem>>, vector<16x1xf32>
    %29 = vector.broadcast %28 : vector<16x1xf32> to vector<16x288xf32>
    %30 = arith.addf %27, %29 : vector<16x288xf32>
    %cst_23 = arith.constant 0.000000e+00 : f32
    %31 = vector.broadcast %cst_23 : f32 to vector<16x288xf32>
    %32 = arith.maximumf %30, %31 : vector<16x288xf32>
    %33 = vector.extract_strided_slice %32 {offsets = [0, 0], sizes = [16, 287], strides = [1, 1]} : vector<16x288xf32> to vector<16x287xf32>
    %34 = vector.extract_strided_slice %32 {offsets = [0, 1], sizes = [16, 287], strides = [1, 1]} : vector<16x288xf32> to vector<16x287xf32>
    %35 = arith.maximumf %33, %34 : vector<16x287xf32>
    %c0_24 = arith.constant 0 : index
    %c0_25 = arith.constant 0 : index
    %36 = vector.load %arg4[%c0_24, %c0_25] : memref<287x144xf32, #tpu.memory_space<vmem>>, vector<287x144xf32>
    %cst_26 = arith.constant dense<0.000000e+00> : vector<16x144xf32>
    %37 = tpu.matmul %35, %36, %cst_26 {dimension_numbers = #tpu.dot_dimension_numbers<[1], [0], [0], [1], [0, 0, 1, 1], [], []>} : vector<16x287xf32>, vector<287x144xf32>, vector<16x144xf32> -> vector<16x144xf32>
    %c0_27 = arith.constant 0 : index
    %c0_28 = arith.constant 0 : index
    %c0_29 = arith.constant 0 : index
    %38 = vector.load %arg5[%c0_27, %c0_28, %c0_29] : memref<5x32x16xf32, #tpu.memory_space<vmem>>, vector<1x32x16xf32>
    %39 = vector.shape_cast %38 : vector<1x32x16xf32> to vector<32x16xf32>
    %40 = vector.extract_strided_slice %37 {offsets = [0, 0], sizes = [16, 140], strides = [1, 1]} : vector<16x144xf32> to vector<16x140xf32>
    %cst_30 = arith.constant dense<0.000000e+00> : vector<32x140xf32>
    %41 = tpu.matmul %39, %40, %cst_30 {dimension_numbers = #tpu.dot_dimension_numbers<[1], [0], [0], [1], [0, 0, 1, 1], [], []>} : vector<32x16xf32>, vector<16x140xf32>, vector<32x140xf32> -> vector<32x140xf32>
    %c1_31 = arith.constant 1 : index
    %c0_32 = arith.constant 0 : index
    %c0_33 = arith.constant 0 : index
    %42 = vector.load %arg5[%c1_31, %c0_32, %c0_33] : memref<5x32x16xf32, #tpu.memory_space<vmem>>, vector<1x32x16xf32>
    %43 = vector.shape_cast %42 : vector<1x32x16xf32> to vector<32x16xf32>
    %44 = vector.extract_strided_slice %37 {offsets = [0, 1], sizes = [16, 140], strides = [1, 1]} : vector<16x144xf32> to vector<16x140xf32>
    %cst_34 = arith.constant dense<0.000000e+00> : vector<32x140xf32>
    %45 = tpu.matmul %43, %44, %cst_34 {dimension_numbers = #tpu.dot_dimension_numbers<[1], [0], [0], [1], [0, 0, 1, 1], [], []>} : vector<32x16xf32>, vector<16x140xf32>, vector<32x140xf32> -> vector<32x140xf32>
    %46 = arith.addf %41, %45 : vector<32x140xf32>
    %c2_35 = arith.constant 2 : index
    %c0_36 = arith.constant 0 : index
    %c0_37 = arith.constant 0 : index
    %47 = vector.load %arg5[%c2_35, %c0_36, %c0_37] : memref<5x32x16xf32, #tpu.memory_space<vmem>>, vector<1x32x16xf32>
    %48 = vector.shape_cast %47 : vector<1x32x16xf32> to vector<32x16xf32>
    %49 = vector.extract_strided_slice %37 {offsets = [0, 2], sizes = [16, 140], strides = [1, 1]} : vector<16x144xf32> to vector<16x140xf32>
    %cst_38 = arith.constant dense<0.000000e+00> : vector<32x140xf32>
    %50 = tpu.matmul %48, %49, %cst_38 {dimension_numbers = #tpu.dot_dimension_numbers<[1], [0], [0], [1], [0, 0, 1, 1], [], []>} : vector<32x16xf32>, vector<16x140xf32>, vector<32x140xf32> -> vector<32x140xf32>
    %51 = arith.addf %46, %50 : vector<32x140xf32>
    %c3_39 = arith.constant 3 : index
    %c0_40 = arith.constant 0 : index
    %c0_41 = arith.constant 0 : index
    %52 = vector.load %arg5[%c3_39, %c0_40, %c0_41] : memref<5x32x16xf32, #tpu.memory_space<vmem>>, vector<1x32x16xf32>
    %53 = vector.shape_cast %52 : vector<1x32x16xf32> to vector<32x16xf32>
    %54 = vector.extract_strided_slice %37 {offsets = [0, 3], sizes = [16, 140], strides = [1, 1]} : vector<16x144xf32> to vector<16x140xf32>
    %cst_42 = arith.constant dense<0.000000e+00> : vector<32x140xf32>
    %55 = tpu.matmul %53, %54, %cst_42 {dimension_numbers = #tpu.dot_dimension_numbers<[1], [0], [0], [1], [0, 0, 1, 1], [], []>} : vector<32x16xf32>, vector<16x140xf32>, vector<32x140xf32> -> vector<32x140xf32>
    %56 = arith.addf %51, %55 : vector<32x140xf32>
    %c4_43 = arith.constant 4 : index
    %c0_44 = arith.constant 0 : index
    %c0_45 = arith.constant 0 : index
    %57 = vector.load %arg5[%c4_43, %c0_44, %c0_45] : memref<5x32x16xf32, #tpu.memory_space<vmem>>, vector<1x32x16xf32>
    %58 = vector.shape_cast %57 : vector<1x32x16xf32> to vector<32x16xf32>
    %59 = vector.extract_strided_slice %37 {offsets = [0, 4], sizes = [16, 140], strides = [1, 1]} : vector<16x144xf32> to vector<16x140xf32>
    %cst_46 = arith.constant dense<0.000000e+00> : vector<32x140xf32>
    %60 = tpu.matmul %58, %59, %cst_46 {dimension_numbers = #tpu.dot_dimension_numbers<[1], [0], [0], [1], [0, 0, 1, 1], [], []>} : vector<32x16xf32>, vector<16x140xf32>, vector<32x140xf32> -> vector<32x140xf32>
    %61 = arith.addf %56, %60 : vector<32x140xf32>
    %c0_47 = arith.constant 0 : index
    %c0_48 = arith.constant 0 : index
    %62 = vector.load %arg6[%c0_47, %c0_48] : memref<32x1xf32, #tpu.memory_space<vmem>>, vector<32x1xf32>
    %63 = vector.broadcast %62 : vector<32x1xf32> to vector<32x140xf32>
    %64 = arith.addf %61, %63 : vector<32x140xf32>
    %cst_49 = arith.constant 0.000000e+00 : f32
    %65 = vector.broadcast %cst_49 : f32 to vector<32x140xf32>
    %66 = arith.maximumf %64, %65 : vector<32x140xf32>
    %67 = vector.extract_strided_slice %66 {offsets = [0, 0], sizes = [32, 139], strides = [1, 1]} : vector<32x140xf32> to vector<32x139xf32>
    %68 = vector.extract_strided_slice %66 {offsets = [0, 1], sizes = [32, 139], strides = [1, 1]} : vector<32x140xf32> to vector<32x139xf32>
    %69 = arith.maximumf %67, %68 : vector<32x139xf32>
    %c0_50 = arith.constant 0 : index
    %c0_51 = arith.constant 0 : index
    %70 = vector.load %arg7[%c0_50, %c0_51] : memref<139x70xf32, #tpu.memory_space<vmem>>, vector<139x70xf32>
    %cst_52 = arith.constant dense<0.000000e+00> : vector<32x70xf32>
    %71 = tpu.matmul %69, %70, %cst_52 {dimension_numbers = #tpu.dot_dimension_numbers<[1], [0], [0], [1], [0, 0, 1, 1], [], []>} : vector<32x139xf32>, vector<139x70xf32>, vector<32x70xf32> -> vector<32x70xf32>
    %c0_53 = arith.constant 0 : index
    %c0_54 = arith.constant 0 : index
    %c0_55 = arith.constant 0 : index
    %72 = vector.load %arg8[%c0_53, %c0_54, %c0_55] : memref<5x64x32xf32, #tpu.memory_space<vmem>>, vector<1x64x32xf32>
    %73 = vector.shape_cast %72 : vector<1x64x32xf32> to vector<64x32xf32>
    %74 = vector.extract_strided_slice %71 {offsets = [0, 0], sizes = [32, 66], strides = [1, 1]} : vector<32x70xf32> to vector<32x66xf32>
    %cst_56 = arith.constant dense<0.000000e+00> : vector<64x66xf32>
    %75 = tpu.matmul %73, %74, %cst_56 {dimension_numbers = #tpu.dot_dimension_numbers<[1], [0], [0], [1], [0, 0, 1, 1], [], []>} : vector<64x32xf32>, vector<32x66xf32>, vector<64x66xf32> -> vector<64x66xf32>
    %c1_57 = arith.constant 1 : index
    %c0_58 = arith.constant 0 : index
    %c0_59 = arith.constant 0 : index
    %76 = vector.load %arg8[%c1_57, %c0_58, %c0_59] : memref<5x64x32xf32, #tpu.memory_space<vmem>>, vector<1x64x32xf32>
    %77 = vector.shape_cast %76 : vector<1x64x32xf32> to vector<64x32xf32>
    %78 = vector.extract_strided_slice %71 {offsets = [0, 1], sizes = [32, 66], strides = [1, 1]} : vector<32x70xf32> to vector<32x66xf32>
    %cst_60 = arith.constant dense<0.000000e+00> : vector<64x66xf32>
    %79 = tpu.matmul %77, %78, %cst_60 {dimension_numbers = #tpu.dot_dimension_numbers<[1], [0], [0], [1], [0, 0, 1, 1], [], []>} : vector<64x32xf32>, vector<32x66xf32>, vector<64x66xf32> -> vector<64x66xf32>
    %80 = arith.addf %75, %79 : vector<64x66xf32>
    %c2_61 = arith.constant 2 : index
    %c0_62 = arith.constant 0 : index
    %c0_63 = arith.constant 0 : index
    %81 = vector.load %arg8[%c2_61, %c0_62, %c0_63] : memref<5x64x32xf32, #tpu.memory_space<vmem>>, vector<1x64x32xf32>
    %82 = vector.shape_cast %81 : vector<1x64x32xf32> to vector<64x32xf32>
    %83 = vector.extract_strided_slice %71 {offsets = [0, 2], sizes = [32, 66], strides = [1, 1]} : vector<32x70xf32> to vector<32x66xf32>
    %cst_64 = arith.constant dense<0.000000e+00> : vector<64x66xf32>
    %84 = tpu.matmul %82, %83, %cst_64 {dimension_numbers = #tpu.dot_dimension_numbers<[1], [0], [0], [1], [0, 0, 1, 1], [], []>} : vector<64x32xf32>, vector<32x66xf32>, vector<64x66xf32> -> vector<64x66xf32>
    %85 = arith.addf %80, %84 : vector<64x66xf32>
    %c3_65 = arith.constant 3 : index
    %c0_66 = arith.constant 0 : index
    %c0_67 = arith.constant 0 : index
    %86 = vector.load %arg8[%c3_65, %c0_66, %c0_67] : memref<5x64x32xf32, #tpu.memory_space<vmem>>, vector<1x64x32xf32>
    %87 = vector.shape_cast %86 : vector<1x64x32xf32> to vector<64x32xf32>
    %88 = vector.extract_strided_slice %71 {offsets = [0, 3], sizes = [32, 66], strides = [1, 1]} : vector<32x70xf32> to vector<32x66xf32>
    %cst_68 = arith.constant dense<0.000000e+00> : vector<64x66xf32>
    %89 = tpu.matmul %87, %88, %cst_68 {dimension_numbers = #tpu.dot_dimension_numbers<[1], [0], [0], [1], [0, 0, 1, 1], [], []>} : vector<64x32xf32>, vector<32x66xf32>, vector<64x66xf32> -> vector<64x66xf32>
    %90 = arith.addf %85, %89 : vector<64x66xf32>
    %c4_69 = arith.constant 4 : index
    %c0_70 = arith.constant 0 : index
    %c0_71 = arith.constant 0 : index
    %91 = vector.load %arg8[%c4_69, %c0_70, %c0_71] : memref<5x64x32xf32, #tpu.memory_space<vmem>>, vector<1x64x32xf32>
    %92 = vector.shape_cast %91 : vector<1x64x32xf32> to vector<64x32xf32>
    %93 = vector.extract_strided_slice %71 {offsets = [0, 4], sizes = [32, 66], strides = [1, 1]} : vector<32x70xf32> to vector<32x66xf32>
    %cst_72 = arith.constant dense<0.000000e+00> : vector<64x66xf32>
    %94 = tpu.matmul %92, %93, %cst_72 {dimension_numbers = #tpu.dot_dimension_numbers<[1], [0], [0], [1], [0, 0, 1, 1], [], []>} : vector<64x32xf32>, vector<32x66xf32>, vector<64x66xf32> -> vector<64x66xf32>
    %95 = arith.addf %90, %94 : vector<64x66xf32>
    %c0_73 = arith.constant 0 : index
    %c0_74 = arith.constant 0 : index
    %96 = vector.load %arg9[%c0_73, %c0_74] : memref<64x1xf32, #tpu.memory_space<vmem>>, vector<64x1xf32>
    %97 = vector.broadcast %96 : vector<64x1xf32> to vector<64x66xf32>
    %98 = arith.addf %95, %97 : vector<64x66xf32>
    %cst_75 = arith.constant 0.000000e+00 : f32
    %99 = vector.broadcast %cst_75 : f32 to vector<64x66xf32>
    %100 = arith.maximumf %98, %99 : vector<64x66xf32>
    %101 = vector.extract_strided_slice %100 {offsets = [0, 0], sizes = [64, 65], strides = [1, 1]} : vector<64x66xf32> to vector<64x65xf32>
    %102 = vector.extract_strided_slice %100 {offsets = [0, 1], sizes = [64, 65], strides = [1, 1]} : vector<64x66xf32> to vector<64x65xf32>
    %103 = arith.maximumf %101, %102 : vector<64x65xf32>
    %c0_76 = arith.constant 0 : index
    %c0_77 = arith.constant 0 : index
    %104 = vector.load %arg10[%c0_76, %c0_77] : memref<65x33xf32, #tpu.memory_space<vmem>>, vector<65x33xf32>
    %cst_78 = arith.constant dense<0.000000e+00> : vector<64x33xf32>
    %105 = tpu.matmul %103, %104, %cst_78 {dimension_numbers = #tpu.dot_dimension_numbers<[1], [0], [0], [1], [0, 0, 1, 1], [], []>} : vector<64x65xf32>, vector<65x33xf32>, vector<64x33xf32> -> vector<64x33xf32>
    %cst_79 = arith.constant 0.000000e+00 : f32
    %106 = vector.broadcast %cst_79 : f32 to vector<1x256xf32>
    %107 = vector.extract_strided_slice %105 {offsets = [0, 0], sizes = [8, 33], strides = [1, 1]} : vector<64x33xf32> to vector<8x33xf32>
    %c0_80 = arith.constant 0 : index
    %c0_81 = arith.constant 0 : index
    %c0_82 = arith.constant 0 : index
    %108 = vector.load %arg11[%c0_80, %c0_81, %c0_82] : memref<8x33x256xf32, #tpu.memory_space<vmem>>, vector<1x33x256xf32>
    %109 = vector.shape_cast %108 : vector<1x33x256xf32> to vector<33x256xf32>
    %cst_83 = arith.constant dense<0.000000e+00> : vector<8x256xf32>
    %110 = tpu.matmul %107, %109, %cst_83 {dimension_numbers = #tpu.dot_dimension_numbers<[1], [0], [0], [1], [0, 0, 1, 1], [], []>} : vector<8x33xf32>, vector<33x256xf32>, vector<8x256xf32> -> vector<8x256xf32>
    %111 = arith.mulf %110, %0 : vector<8x256xf32>
    %cst_84 = arith.constant dense<0.000000e+00> : vector<256xf32>
    %112 = vector.multi_reduction <add>, %111, %cst_84 [0] : vector<8x256xf32> to vector<256xf32>
    %113 = vector.shape_cast %112 : vector<256xf32> to vector<1x256xf32>
    %114 = arith.addf %106, %113 : vector<1x256xf32>
    %115 = vector.extract_strided_slice %105 {offsets = [8, 0], sizes = [8, 33], strides = [1, 1]} : vector<64x33xf32> to vector<8x33xf32>
    %c1_85 = arith.constant 1 : index
    %c0_86 = arith.constant 0 : index
    %c0_87 = arith.constant 0 : index
    %116 = vector.load %arg11[%c1_85, %c0_86, %c0_87] : memref<8x33x256xf32, #tpu.memory_space<vmem>>, vector<1x33x256xf32>
    %117 = vector.shape_cast %116 : vector<1x33x256xf32> to vector<33x256xf32>
    %cst_88 = arith.constant dense<0.000000e+00> : vector<8x256xf32>
    %118 = tpu.matmul %115, %117, %cst_88 {dimension_numbers = #tpu.dot_dimension_numbers<[1], [0], [0], [1], [0, 0, 1, 1], [], []>} : vector<8x33xf32>, vector<33x256xf32>, vector<8x256xf32> -> vector<8x256xf32>
    %119 = arith.mulf %118, %0 : vector<8x256xf32>
    %cst_89 = arith.constant dense<0.000000e+00> : vector<256xf32>
    %120 = vector.multi_reduction <add>, %119, %cst_89 [0] : vector<8x256xf32> to vector<256xf32>
    %121 = vector.shape_cast %120 : vector<256xf32> to vector<1x256xf32>
    %122 = arith.addf %114, %121 : vector<1x256xf32>
    %123 = vector.extract_strided_slice %105 {offsets = [16, 0], sizes = [8, 33], strides = [1, 1]} : vector<64x33xf32> to vector<8x33xf32>
    %c2_90 = arith.constant 2 : index
    %c0_91 = arith.constant 0 : index
    %c0_92 = arith.constant 0 : index
    %124 = vector.load %arg11[%c2_90, %c0_91, %c0_92] : memref<8x33x256xf32, #tpu.memory_space<vmem>>, vector<1x33x256xf32>
    %125 = vector.shape_cast %124 : vector<1x33x256xf32> to vector<33x256xf32>
    %cst_93 = arith.constant dense<0.000000e+00> : vector<8x256xf32>
    %126 = tpu.matmul %123, %125, %cst_93 {dimension_numbers = #tpu.dot_dimension_numbers<[1], [0], [0], [1], [0, 0, 1, 1], [], []>} : vector<8x33xf32>, vector<33x256xf32>, vector<8x256xf32> -> vector<8x256xf32>
    %127 = arith.mulf %126, %0 : vector<8x256xf32>
    %cst_94 = arith.constant dense<0.000000e+00> : vector<256xf32>
    %128 = vector.multi_reduction <add>, %127, %cst_94 [0] : vector<8x256xf32> to vector<256xf32>
    %129 = vector.shape_cast %128 : vector<256xf32> to vector<1x256xf32>
    %130 = arith.addf %122, %129 : vector<1x256xf32>
    %131 = vector.extract_strided_slice %105 {offsets = [24, 0], sizes = [8, 33], strides = [1, 1]} : vector<64x33xf32> to vector<8x33xf32>
    %c3_95 = arith.constant 3 : index
    %c0_96 = arith.constant 0 : index
    %c0_97 = arith.constant 0 : index
    %132 = vector.load %arg11[%c3_95, %c0_96, %c0_97] : memref<8x33x256xf32, #tpu.memory_space<vmem>>, vector<1x33x256xf32>
    %133 = vector.shape_cast %132 : vector<1x33x256xf32> to vector<33x256xf32>
    %cst_98 = arith.constant dense<0.000000e+00> : vector<8x256xf32>
    %134 = tpu.matmul %131, %133, %cst_98 {dimension_numbers = #tpu.dot_dimension_numbers<[1], [0], [0], [1], [0, 0, 1, 1], [], []>} : vector<8x33xf32>, vector<33x256xf32>, vector<8x256xf32> -> vector<8x256xf32>
    %135 = arith.mulf %134, %0 : vector<8x256xf32>
    %cst_99 = arith.constant dense<0.000000e+00> : vector<256xf32>
    %136 = vector.multi_reduction <add>, %135, %cst_99 [0] : vector<8x256xf32> to vector<256xf32>
    %137 = vector.shape_cast %136 : vector<256xf32> to vector<1x256xf32>
    %138 = arith.addf %130, %137 : vector<1x256xf32>
    %139 = vector.extract_strided_slice %105 {offsets = [32, 0], sizes = [8, 33], strides = [1, 1]} : vector<64x33xf32> to vector<8x33xf32>
    %c4_100 = arith.constant 4 : index
    %c0_101 = arith.constant 0 : index
    %c0_102 = arith.constant 0 : index
    %140 = vector.load %arg11[%c4_100, %c0_101, %c0_102] : memref<8x33x256xf32, #tpu.memory_space<vmem>>, vector<1x33x256xf32>
    %141 = vector.shape_cast %140 : vector<1x33x256xf32> to vector<33x256xf32>
    %cst_103 = arith.constant dense<0.000000e+00> : vector<8x256xf32>
    %142 = tpu.matmul %139, %141, %cst_103 {dimension_numbers = #tpu.dot_dimension_numbers<[1], [0], [0], [1], [0, 0, 1, 1], [], []>} : vector<8x33xf32>, vector<33x256xf32>, vector<8x256xf32> -> vector<8x256xf32>
    %143 = arith.mulf %142, %0 : vector<8x256xf32>
    %cst_104 = arith.constant dense<0.000000e+00> : vector<256xf32>
    %144 = vector.multi_reduction <add>, %143, %cst_104 [0] : vector<8x256xf32> to vector<256xf32>
    %145 = vector.shape_cast %144 : vector<256xf32> to vector<1x256xf32>
    %146 = arith.addf %138, %145 : vector<1x256xf32>
    %147 = vector.extract_strided_slice %105 {offsets = [40, 0], sizes = [8, 33], strides = [1, 1]} : vector<64x33xf32> to vector<8x33xf32>
    %c5 = arith.constant 5 : index
    %c0_105 = arith.constant 0 : index
    %c0_106 = arith.constant 0 : index
    %148 = vector.load %arg11[%c5, %c0_105, %c0_106] : memref<8x33x256xf32, #tpu.memory_space<vmem>>, vector<1x33x256xf32>
    %149 = vector.shape_cast %148 : vector<1x33x256xf32> to vector<33x256xf32>
    %cst_107 = arith.constant dense<0.000000e+00> : vector<8x256xf32>
    %150 = tpu.matmul %147, %149, %cst_107 {dimension_numbers = #tpu.dot_dimension_numbers<[1], [0], [0], [1], [0, 0, 1, 1], [], []>} : vector<8x33xf32>, vector<33x256xf32>, vector<8x256xf32> -> vector<8x256xf32>
    %151 = arith.mulf %150, %0 : vector<8x256xf32>
    %cst_108 = arith.constant dense<0.000000e+00> : vector<256xf32>
    %152 = vector.multi_reduction <add>, %151, %cst_108 [0] : vector<8x256xf32> to vector<256xf32>
    %153 = vector.shape_cast %152 : vector<256xf32> to vector<1x256xf32>
    %154 = arith.addf %146, %153 : vector<1x256xf32>
    %155 = vector.extract_strided_slice %105 {offsets = [48, 0], sizes = [8, 33], strides = [1, 1]} : vector<64x33xf32> to vector<8x33xf32>
    %c6 = arith.constant 6 : index
    %c0_109 = arith.constant 0 : index
    %c0_110 = arith.constant 0 : index
    %156 = vector.load %arg11[%c6, %c0_109, %c0_110] : memref<8x33x256xf32, #tpu.memory_space<vmem>>, vector<1x33x256xf32>
    %157 = vector.shape_cast %156 : vector<1x33x256xf32> to vector<33x256xf32>
    %cst_111 = arith.constant dense<0.000000e+00> : vector<8x256xf32>
    %158 = tpu.matmul %155, %157, %cst_111 {dimension_numbers = #tpu.dot_dimension_numbers<[1], [0], [0], [1], [0, 0, 1, 1], [], []>} : vector<8x33xf32>, vector<33x256xf32>, vector<8x256xf32> -> vector<8x256xf32>
    %159 = arith.mulf %158, %0 : vector<8x256xf32>
    %cst_112 = arith.constant dense<0.000000e+00> : vector<256xf32>
    %160 = vector.multi_reduction <add>, %159, %cst_112 [0] : vector<8x256xf32> to vector<256xf32>
    %161 = vector.shape_cast %160 : vector<256xf32> to vector<1x256xf32>
    %162 = arith.addf %154, %161 : vector<1x256xf32>
    %163 = vector.extract_strided_slice %105 {offsets = [56, 0], sizes = [8, 33], strides = [1, 1]} : vector<64x33xf32> to vector<8x33xf32>
    %c7 = arith.constant 7 : index
    %c0_113 = arith.constant 0 : index
    %c0_114 = arith.constant 0 : index
    %164 = vector.load %arg11[%c7, %c0_113, %c0_114] : memref<8x33x256xf32, #tpu.memory_space<vmem>>, vector<1x33x256xf32>
    %165 = vector.shape_cast %164 : vector<1x33x256xf32> to vector<33x256xf32>
    %cst_115 = arith.constant dense<0.000000e+00> : vector<8x256xf32>
    %166 = tpu.matmul %163, %165, %cst_115 {dimension_numbers = #tpu.dot_dimension_numbers<[1], [0], [0], [1], [0, 0, 1, 1], [], []>} : vector<8x33xf32>, vector<33x256xf32>, vector<8x256xf32> -> vector<8x256xf32>
    %167 = arith.mulf %166, %0 : vector<8x256xf32>
    %cst_116 = arith.constant dense<0.000000e+00> : vector<256xf32>
    %168 = vector.multi_reduction <add>, %167, %cst_116 [0] : vector<8x256xf32> to vector<256xf32>
    %169 = vector.shape_cast %168 : vector<256xf32> to vector<1x256xf32>
    %170 = arith.addf %162, %169 : vector<1x256xf32>
    %cst_117 = arith.constant dense<0.000000e+00> : vector<1x32xf32>
    %171 = tpu.matmul %170, %1, %cst_117 {dimension_numbers = #tpu.dot_dimension_numbers<[1], [0], [0], [1], [0, 0, 1, 1], [], []>} : vector<1x256xf32>, vector<256x32xf32>, vector<1x32xf32> -> vector<1x32xf32>
    %c0_118 = arith.constant 0 : index
    %c0_119 = arith.constant 0 : index
    %172 = vector.load %arg14[%c0_118, %c0_119] : memref<1x32xf32, #tpu.memory_space<vmem>>, vector<1x32xf32>
    %173 = arith.addf %171, %172 : vector<1x32xf32>
    %cst_120 = arith.constant 0.000000e+00 : f32
    %174 = vector.broadcast %cst_120 : f32 to vector<1x32xf32>
    %175 = arith.maximumf %173, %174 : vector<1x32xf32>
    %c0_121 = arith.constant 0 : index
    %c0_122 = arith.constant 0 : index
    %176 = vector.load %arg15[%c0_121, %c0_122] : memref<32x2xf32, #tpu.memory_space<vmem>>, vector<32x2xf32>
    %cst_123 = arith.constant dense<0.000000e+00> : vector<1x2xf32>
    %177 = tpu.matmul %175, %176, %cst_123 {dimension_numbers = #tpu.dot_dimension_numbers<[1], [0], [0], [1], [0, 0, 1, 1], [], []>} : vector<1x32xf32>, vector<32x2xf32>, vector<1x2xf32> -> vector<1x2xf32>
    %c0_124 = arith.constant 0 : index
    %c0_125 = arith.constant 0 : index
    %178 = vector.load %arg16[%c0_124, %c0_125] : memref<1x2xf32, #tpu.memory_space<vmem>>, vector<1x2xf32>
    %179 = arith.addf %177, %178 : vector<1x2xf32>
    %cst_126 = arith.constant dense<0xFF800000> : vector<1xf32>
    %180 = vector.multi_reduction <maximumf>, %179, %cst_126 [1] : vector<1x2xf32> to vector<1xf32>
    %181 = vector.shape_cast %180 : vector<1xf32> to vector<1x1xf32>
    %182 = vector.broadcast %181 : vector<1x1xf32> to vector<1x2xf32>
    %183 = arith.subf %179, %182 : vector<1x2xf32>
    %184 = math.exp %183 : vector<1x2xf32>
    %cst_127 = arith.constant dense<0.000000e+00> : vector<1xf32>
    %185 = vector.multi_reduction <add>, %184, %cst_127 [1] : vector<1x2xf32> to vector<1xf32>
    %186 = vector.shape_cast %185 : vector<1xf32> to vector<1x1xf32>
    %187 = vector.broadcast %186 : vector<1x1xf32> to vector<1x2xf32>
    %188 = arith.divf %184, %187 : vector<1x2xf32>
    %c0_128 = arith.constant 0 : index
    %c0_129 = arith.constant 0 : index
    %c0_130 = arith.constant 0 : index
    %189 = vector.load %arg17[%c0_128, %c0_129, %c0_130] : memref<1x1x2xf32, #tpu.memory_space<vmem>>, vector<1x1x2xf32>
    %190 = vector.shape_cast %189 : vector<1x1x2xf32> to vector<1x2xf32>
    %191 = vector.shape_cast %188 : vector<1x2xf32> to vector<1x1x2xf32>
    tpu.vector_store %arg17[%c0_128, %c0_129, %c0_130], %191 {strides = array<i32>} : memref<1x1x2xf32, #tpu.memory_space<vmem>>, vector<1x1x2xf32>,
    return
  }
  func.func @transform_0(%arg0: i32) -> (i32, i32, i32) {
    %c0_i32 = arith.constant 0 : i32
    %c0_i32_0 = arith.constant 0 : i32
    %c0_i32_1 = arith.constant 0 : i32
    return %arg0, %c0_i32, %c0_i32_0 : i32, i32, i32
  }
  func.func @transform_1(%arg0: i32) -> (i32, i32, i32) {
    %c0_i32 = arith.constant 0 : i32
    %c0_i32_0 = arith.constant 0 : i32
    %c0_i32_1 = arith.constant 0 : i32
    %c0_i32_2 = arith.constant 0 : i32
    return %c0_i32, %c0_i32_0, %c0_i32_1 : i32, i32, i32
  }
  func.func @transform_2(%arg0: i32) -> (i32, i32) {
    %c0_i32 = arith.constant 0 : i32
    %c0_i32_0 = arith.constant 0 : i32
    %c0_i32_1 = arith.constant 0 : i32
    return %c0_i32, %c0_i32_0 : i32, i32
  }
  func.func @transform_3(%arg0: i32) -> (i32, i32) {
    %c0_i32 = arith.constant 0 : i32
    %c0_i32_0 = arith.constant 0 : i32
    %c0_i32_1 = arith.constant 0 : i32
    return %c0_i32, %c0_i32_0 : i32, i32
  }
  func.func @transform_4(%arg0: i32) -> (i32, i32, i32) {
    %c0_i32 = arith.constant 0 : i32
    %c0_i32_0 = arith.constant 0 : i32
    %c0_i32_1 = arith.constant 0 : i32
    %c0_i32_2 = arith.constant 0 : i32
    return %c0_i32, %c0_i32_0, %c0_i32_1 : i32, i32, i32
  }
  func.func @transform_5(%arg0: i32) -> (i32, i32) {
    %c0_i32 = arith.constant 0 : i32
    %c0_i32_0 = arith.constant 0 : i32
    %c0_i32_1 = arith.constant 0 : i32
    return %c0_i32, %c0_i32_0 : i32, i32
  }
  func.func @transform_6(%arg0: i32) -> (i32, i32) {
    %c0_i32 = arith.constant 0 : i32
    %c0_i32_0 = arith.constant 0 : i32
    %c0_i32_1 = arith.constant 0 : i32
    return %c0_i32, %c0_i32_0 : i32, i32
  }
  func.func @transform_7(%arg0: i32) -> (i32, i32, i32) {
    %c0_i32 = arith.constant 0 : i32
    %c0_i32_0 = arith.constant 0 : i32
    %c0_i32_1 = arith.constant 0 : i32
    %c0_i32_2 = arith.constant 0 : i32
    return %c0_i32, %c0_i32_0, %c0_i32_1 : i32, i32, i32
  }
  func.func @transform_8(%arg0: i32) -> (i32, i32) {
    %c0_i32 = arith.constant 0 : i32
    %c0_i32_0 = arith.constant 0 : i32
    %c0_i32_1 = arith.constant 0 : i32
    return %c0_i32, %c0_i32_0 : i32, i32
  }
  func.func @transform_9(%arg0: i32) -> (i32, i32) {
    %c0_i32 = arith.constant 0 : i32
    %c0_i32_0 = arith.constant 0 : i32
    %c0_i32_1 = arith.constant 0 : i32
    return %c0_i32, %c0_i32_0 : i32, i32
  }
  func.func @transform_10(%arg0: i32) -> (i32, i32, i32) {
    %c0_i32 = arith.constant 0 : i32
    %c0_i32_0 = arith.constant 0 : i32
    %c0_i32_1 = arith.constant 0 : i32
    %c0_i32_2 = arith.constant 0 : i32
    return %c0_i32, %c0_i32_0, %c0_i32_1 : i32, i32, i32
  }
  func.func @transform_11(%arg0: i32) -> (i32, i32) {
    %c0_i32 = arith.constant 0 : i32
    %c0_i32_0 = arith.constant 0 : i32
    %c0_i32_1 = arith.constant 0 : i32
    return %c0_i32, %c0_i32_0 : i32, i32
  }
  func.func @transform_12(%arg0: i32) -> (i32, i32) {
    %c0_i32 = arith.constant 0 : i32
    %c0_i32_0 = arith.constant 0 : i32
    %c0_i32_1 = arith.constant 0 : i32
    return %c0_i32, %c0_i32_0 : i32, i32
  }
  func.func @transform_13(%arg0: i32) -> (i32, i32) {
    %c0_i32 = arith.constant 0 : i32
    %c0_i32_0 = arith.constant 0 : i32
    %c0_i32_1 = arith.constant 0 : i32
    return %c0_i32, %c0_i32_0 : i32, i32
  }
  func.func @transform_14(%arg0: i32) -> (i32, i32) {
    %c0_i32 = arith.constant 0 : i32
    %c0_i32_0 = arith.constant 0 : i32
    %c0_i32_1 = arith.constant 0 : i32
    return %c0_i32, %c0_i32_0 : i32, i32
  }
  func.func @transform_15(%arg0: i32) -> (i32, i32) {
    %c0_i32 = arith.constant 0 : i32
    %c0_i32_0 = arith.constant 0 : i32
    %c0_i32_1 = arith.constant 0 : i32
    return %c0_i32, %c0_i32_0 : i32, i32
  }
  func.func @transform_16(%arg0: i32) -> (i32, i32, i32) {
    %c0_i32 = arith.constant 0 : i32
    %c0_i32_0 = arith.constant 0 : i32
    %c0_i32_1 = arith.constant 0 : i32
    return %arg0, %c0_i32, %c0_i32_0 : i32, i32, i32
  }
}

</mosaic_0001>

<bundles_post_ra>
// kernel: cnn_test_forward.1
= control target key start
LH: loop header
LB: loop body
LE: loop exit
PB: predicated region body
PF: predicated region fallthrough
CT: control target
= control target key end

     0   :  { %s7240_s0 = inlined_call_operand.vmem [shape: f32[2,4,292], index: 0, kind: input, shape index: {}]   ;;  %s7241_s1 = inlined_call_operand.vmem [shape: f32[5,16,4], index: 1, kind: input, shape index: {}]   ;;  %s7242_s2 = inlined_call_operand.vmem [shape: f32[16,1], index: 2, kind: input, shape index: {}]   ;;  %s7243_s3 = inlined_call_operand.vmem [shape: f32[287,144], index: 3, kind: input, shape index: {}]   ;;  %s7244_s4 = inlined_call_operand.vmem [shape: f32[5,32,16], index: 4, kind: input, shape index: {}]   ;;  %s7245_s5 = inlined_call_operand.vmem [shape: f32[32,1], index: 5, kind: input, shape index: {}]   ;;  %s7246_s6 = inlined_call_operand.vmem [shape: f32[139,70], index: 6, kind: input, shape index: {}]   ;;  %s7247_s7 = inlined_call_operand.vmem [shape: f32[5,64,32], index: 7, kind: input, shape index: {}]   ;;  %s7248_s8 = inlined_call_operand.vmem [shape: f32[64,1], index: 8, kind: input, shape index: {}]   ;;  %s7249_s9 = inlined_call_operand.vmem [shape: f32[65,33], index: 9, kind: input, shape index: {}]   ;;  %s7250_s10 = inlined_call_operand.vmem [shape: f32[8,33,256], index: 10, kind: input, shape index: {}]   ;;  %s7251_s11 = inlined_call_operand.vmem [shape: f32[8,256], index: 11, kind: input, shape index: {}]   ;;  %s7252_s12 = inlined_call_operand.vmem [shape: f32[256,32], index: 12, kind: input, shape index: {}]   ;;  %s7253_s13 = inlined_call_operand.vmem [shape: f32[1,32], index: 13, kind: input, shape index: {}]   ;;  %s7254_s14 = inlined_call_operand.vmem [shape: f32[32,2], index: 14, kind: input, shape index: {}]   ;;  %s7255_s15 = inlined_call_operand.vmem [shape: f32[1,2], index: 15, kind: input, shape index: {}]   ;;  %s7256_s16 = inlined_call_operand.hbm [shape: f32[2,1,2], index: 16, kind: output, shape index: {}]  }
   0x1   :  { %7268 = sst [smem:[#allocation8_spill]] %s7240_s0 }
   0x2   :  { %7269 = sst [smem:[#allocation9_spill]] %s7241_s1 }
   0x3   :  { %7270 = sst [smem:[#allocation10_spill]] %s7242_s2 }
   0x4   :  { %7271 = sst [smem:[#allocation11_spill]] %s7243_s3 }
   0x5   :  { %21 = vsyncpa [#allocation3], 0 }
   0x6   :  { %23 = vsyncpa [#allocation3 + $0x1], 0  ;;  %s5911_s21 = smov 0   ;;  %s5913_s22 = smov 0  }
   0x7   :  { %s5915_s23 = smov 0   ;;  %s5917_s24 = smov 0  }
   0x8 LB: > { %7272 = sst [smem:[#allocation5_spill]] %s5810_s23  ;;  %s5932_s25 = sadd.s32 4294967295, %s5814_s24   ;;  %s5814_s24 = sphi %s5917_s24, %s7285_s24   ;;  %s5810_s23 = sphi %s5915_s23, %s7287_s23   ;;  %s5806_s22 = sphi %s5913_s22, %s7289_s22   ;;  %s5802_s21 = sphi %s5911_s21, %s7288_s21  }
   0x9   : > { %s4664_s26 = sadd.s32 4294967294, %s5814_s24   ;;  %s5936_s27 = sadd.s32 1, %s5814_s24  }
   0xa   : > { %7273 = sst [smem:[#allocation6_spill]] %s5936_s27  ;;  %s377_s28 = sadd.s32 1, %s5810_s23 }
   0xb   : > { %s374_s29 = ssub.s32 %s5814_s24, %s5936_s27  ;;  %p387_p0 = scmp.ne.s32.totalorder %s5810_s23, %s5806_s22 }
   0xc   : > { %p375_p1 = scmp.eq.s32.totalorder %s374_s29, 0  ;;  %p388_p2 = scmp.eq.s32.totalorder %s5932_s25, 1 }
   0xd   : > { %p393_p3 = scmp.ne.s32.totalorder %s5806_s22, %s5802_s21  ;;  %p394_p4 = scmp.eq.s32.totalorder %s4664_s26, 1 }
   0xe   : > { %s5947_s30 = scalar_select %p375_p1, %s5810_s23, %s377_s28  }
   0xf   : > { %p5949_p5 = por %p388_p2, %p387_p0  ;;  %p5953_p6 = por %p394_p4, %p393_p3 }
  0x10   : > { %7274 = sst [smem:[#allocation7_spill]] %s5947_s30  ;;  %p4667_p7 = scmp.ge.s32.totalorder %s5814_s24, 1 }
  0x11   : > { %p465_p8 = scmp.lt.s32.totalorder %s5814_s24, 3 }
  0x13   : > { %p466_p9 = pnand %p4667_p7, %p465_p8 }
  0x14   : > { %p514_p10 = scmp.lt.s32.totalorder (!%p466_p9), %s5932_s25, 1  ;;  %s7277_s1 = sld [smem:[#allocation9_spill]] (!%p466_p9)  ;;  %vm572_vm0 = vcmask (!%p466_p9), 31744   ;;  %v5816_v1 = vmov (!%p466_p9), 0.0   ;;  %v5821_v7 = vmov (!%p466_p9), 0   ;;  %vm579_vm1 = vcmask (!%p466_p9), 1043456  }
  0x15   : > { %469 = sbr.rel (%p466_p9) target bundleno = 3272 (0xcc8), region = 84  ;;  %650 = vmatprep.mubr.f32.mxu0 (!%p466_p9), %v5816_v1  ;;  %s7278_s30 = sld [smem:[#allocation8_spill]] (!%p466_p9)  ;;  %5656 = vset.pattern.permute.xlu1 (!%p466_p9), %v5821_v7  ;;  %vm569_vm2 = vcmask (!%p466_p9), 1039360   ;;  %vm911_vm3 = vcmask (!%p466_p9), 1031168   ;;  %vm1093_vm4 = vcmask (!%p466_p9), 1022976   ;;  %vm1275_vm5 = vcmask (!%p466_p9), 1014784  }
  0x16   : > { %s7266_s27 = smov (!%p466_p9), 127   ;;  %s7264_s18 = smov (!%p466_p9), 126   ;;  %5655 = vset.pattern.permute.xlu0 (!%p466_p9), %v5821_v7  ;;  %vm1585_vm6 = vcmask (!%p466_p9), 1046528   ;;  %vm5822_vm7 = vmmov (!%p466_p9), 1   ;;  %vm1578_vm9 = vcmask (!%p466_p9), 252928   ;;  %vm1773_vm10 = vcmask (!%p466_p9), 130048  }
  0x17   : > { %s7262_s19 = smov (!%p466_p9), 125   ;;  %s7279_s2 = sld [smem:[#allocation10_spill]] (!%p466_p9)  ;;  %vm5303_vm8 = vmpackc.low (!%p466_p9), %vm1585_vm6, %vm5822_vm7  ;;  %vm2475_vm11 = vcmask (!%p466_p9), 1042432   ;;  %vm2462_vm13 = vcmask (!%p466_p9), 89088   ;;  %vm2597_vm14 = vcmask (!%p466_p9), 261120   ;;  %vm3468_vm15 = vcmask (!%p466_p9), 1040384  }
  0x18   : > { %s7280_s3 = sld [smem:[#allocation11_spill]] (!%p466_p9)  ;;  %s7281_s28 = smov (!%p466_p9), 127   ;;  %vm5354_vm12 = vmpackc.low (!%p466_p9), %vm2475_vm11, %vm5822_vm7 }
  0x1a   : > { %v4669_v0 = vld [vmem:[%s7277_s1 + $0x10] sm:$0xff] (!%p466_p9)  ;;  %v4670_v12 = vld [vmem:[%s7277_s1 + $0x18] sm:$0xff] (!%p466_p9)  ;;  %v555_v15 = vld [vmem:[%s7277_s1] sm:$0xff] (!%p466_p9) }
  0x1b   : > { %5070 = vmatprep.mubr.msk.f32.mxu1 (!%p466_p9), %vm572_vm0, %v4669_v0  ;;  %v556_v19 = vld [vmem:[%s7277_s1 + $0x8] sm:$0xff] (!%p466_p9)  ;;  %v4685_v23 = vld [vmem:[%s7277_s1 + $0x20] sm:$0xff] (!%p466_p9)  ;;  %v4694_v30 = vld [vmem:[%s7277_s1 + $0x30] sm:$0xff] (!%p466_p9) }
  0x1c   : > { %s515_s20 = scalar_select %p514_p10, %s5932_s25, 1  ;;  %v4686_v26 = vld [vmem:[%s7277_s1 + $0x28] sm:$0xff]  ;;  %v4695_v33 = vld [vmem:[%s7277_s1 + $0x38] sm:$0xff]  ;;  %v4703_v35 = vld [vmem:[%s7277_s1 + $0x40] sm:$0xff] }
  0x1d   : > { %v1449_v5 = vld [vmem:[%s7279_s2 + $0x8] sm:$0xff]  ;;  %v1448_v6 = vld [vmem:[%s7279_s2] sm:$0xff] }
  0x1e   : > { %s5606_s26 = smul.u32 12, %s515_s20  ;;  %v4704_v36 = vld [vmem:[%s7277_s1 + $0x48] sm:$0xff]  ;;  %v1509_v38 = vld [vmem:[%s7280_s3 + $0x18] sm:$0xff]  ;;  %v1506_v39 = vld [vmem:[%s7280_s3] sm:$0xff]  ;;  %s7282_s20 = smov 126  }
  0x1f   : > { %v1507_v37 = vld [vmem:[%s7280_s3 + $0x8] sm:$0xff]  ;;  %v1508_v41 = vld [vmem:[%s7280_s3 + $0x10] sm:$0xff]  ;;  %v1513_v43 = vld [vmem:[%s7280_s3 + $0x38] sm:$0xff]  ;;  %s512_s1 = sand.u32 1, %s5806_s22  }
  0x20   : > { %s518_s23 = scalar_lea.vmem %s7278_s30, %s5606_s26  ;;  %s7260_s30 = smov 124   ;;  %v5234_v40 = vpack.c.bf16 %v1509_v38, %v1507_v37  ;;  %v1511_v42 = vld [vmem:[%s7280_s3 + $0x28] sm:$0xff]  ;;  %v5236_v44 = vpack.c.bf16 %v1508_v41, %v1506_v39  ;;  %v1510_v46 = vld [vmem:[%s7280_s3 + $0x20] sm:$0xff]  ;;  %v1512_v47 = vld [vmem:[%s7280_s3 + $0x30] sm:$0xff] }
  0x21   : > { %v553_v2 = vld [vmem:[%s518_s23] sm:$0xff]  ;;  %v554_v4 = vld [vmem:[%s518_s23 + $0x8] sm:$0xf]  ;;  %v5238_v45 = vpack.c.bf16 %v1513_v43, %v1511_v42  ;;  %v1517_v49 = vld [vmem:[%s7280_s3 + $0x58] sm:$0xff]  ;;  %v5240_v50 = vpack.c.bf16 %v1512_v47, %v1510_v46  ;;  %s513_s2 = scalar_lea.vmem [#allocation2], %s512_s1 }
  0x22   : > { %563 = vrot.lane.b32.xlu1 %v553_v2, %s7266_s27  ;;  %v562_v3 = vcombine.high %v553_v2, %v553_v2  ;;  %v1515_v48 = vld [vmem:[%s7280_s3 + $0x48] sm:$0xff]  ;;  %v1514_v52 = vld [vmem:[%s7280_s3 + $0x40] sm:$0xff]  ;;  %v1516_v53 = vld [vmem:[%s7280_s3 + $0x50] sm:$0xff] }
  0x23   : > { %v5242_v51 = vpack.c.bf16 %v1517_v49, %v1515_v48  ;;  %v1519_v54 = vld [vmem:[%s7280_s3 + $0x68] sm:$0xff]  ;;  %v1521_v55 = vld [vmem:[%s7280_s3 + $0x78] sm:$0xff]  ;;  %v5244_v56 = vpack.c.bf16 %v1516_v53, %v1514_v52  ;;  %v1518_v58 = vld [vmem:[%s7280_s3 + $0x60] sm:$0xff] }
  0x24   : > { %565 = vrot.lane.b32.xlu0 %v562_v3, %s7266_s27  ;;  %v5246_v57 = vpack.c.bf16 %v1521_v55, %v1519_v54  ;;  %v1520_v59 = vld [vmem:[%s7280_s3 + $0x70] sm:$0xff]  ;;  %v1523_v60 = vld [vmem:[%s7280_s3 + $0x88] sm:$0xff]  ;;  %v1525_v61 = vld [vmem:[%s7280_s3 + $0x98] sm:$0xff] }
  0x25   : > { %v5248_v62 = vpack.c.bf16 %v1520_v59, %v1518_v58  ;;  %v5250_v63 = vpack.c.bf16 %v1525_v61, %v1523_v60  ;;  %v1526_v7 = vld [vmem:[%s7280_s3 + $0xa0] sm:$0xff]  ;;  %v1548_v38 = vld [vmem:[%s7280_s3 + $0x150] sm:$0xff]  ;;  %v1551_v39 = vld [vmem:[%s7280_s3 + $0x168] sm:$0xff] }
  0x26   : > { %907 = vrot.lane.b32.xlu1 %v562_v3, %s7264_s18  ;;  %v1546_v37 = vld [vmem:[%s7280_s3 + $0x140] sm:$0xff]  ;;  %v1557_v46 = vld [vmem:[%s7280_s3 + $0x198] sm:$0xff]  ;;  %v1563_v58 = vld [vmem:[%s7280_s3 + $0x1c8] sm:$0xff] }
  0x27   : > { %v5276_v41 = vpack.c.bf16 %v1548_v38, %v1546_v37  ;;  %v1550_v43 = vld [vmem:[%s7280_s3 + $0x160] sm:$0xff]  ;;  %v1561_v52 = vld [vmem:[%s7280_s3 + $0x1b8] sm:$0xff]  ;;  %v1572_v37 = vld [vmem:[%s7280_s3 + $0x210] sm:$0xff] }
  0x28   : > { %567 = vrot.lane.b32.xlu0 %v554_v4, %s7266_s27  ;;  %v1554_v49 = vld [vmem:[%s7280_s3 + $0x180] sm:$0xff]  ;;  %v1565_v59 = vld [vmem:[%s7280_s3 + $0x1d8] sm:$0xff]  ;;  %v1575_v38 = vld [vmem:[%s7280_s3 + $0x228] sm:$0xff]  ;;  %s4933_s27 = sshll.u32 %s5932_s25, 4  ;;  %s5825_s25 = smov [#allocation2]  }
  0x29   : > { %v1558_v55 = vld [vmem:[%s7280_s3 + $0x1a0] sm:$0xff]  ;;  %v5290_v60 = vpack.c.bf16 %v1565_v59, %v1563_v58 }
  0x2a   : > { %905 = vrot.lane.b32.xlu1 %v553_v2, %s7264_s18  ;;  %v1562_v61 = vld [vmem:[%s7280_s3 + $0x1c0] sm:$0xff] }
  0x2c   : > { %909 = vrot.lane.b32.xlu0 %v554_v4, %s7264_s18  ;;  %s7284_s18 = smov 124  }
  0x2e   : > { %1091 = vrot.lane.b32.xlu1 %v554_v4, %s7262_s19 }
  0x30   : > { %1089 = vrot.lane.b32.xlu0 %v562_v3, %s7262_s19 }
  0x32   : > { %1271 = vrot.lane.b32.xlu1 %v562_v3, %s7260_s30 }
  0x34   : > { %1087 = vrot.lane.b32.xlu0 %v553_v2, %s7262_s19 }
  0x36   : > { %1269 = vrot.lane.b32.xlu1 %v553_v2, %s7260_s30 }
  0x38   : > { %1273 = vrot.lane.b32.xlu0 %v554_v4, %s7260_s30  ;;  %s7283_s30 = smov 125  }
  0x3a   : > { %1457 = vperm.xlu1 %5656, %v1449_v5  }
  0x3c   : > { %1452 = vperm.xlu0 %5655, %v1448_v6  }
  0x94   : > { %v564_v8 = vpop.permute.xlu1 %563 }
  0x96   : > { %v566_v9 = vpop.permute.xlu0 %565 }
  0x97   : > { %v570_v14 = vsel %vm569_vm2, %v564_v8, %v566_v9  ;;  %v1528_v8 = vld [vmem:[%s7280_s3 + $0xb0] sm:$0xff] }
  0x98   : > { %v908_v10 = vpop.permute.xlu1 %907 }
  0x9a   : > { %v568_v11 = vpop.permute.xlu0 %567 }
  0x9b   : > { %5068 = vmatprep.subr.msk.mxu1 %vm579_vm1, %v568_v11  ;;  %v571_v13 = vsel %vm569_vm2, %v566_v9, %v568_v11  ;;  %v1531_v9 = vld [vmem:[%s7280_s3 + $0xc8] sm:$0xff] }
  0x9c   : > { %4671 = vmatprep.subr.msk.mxu0 %vm579_vm1, %v571_v13  ;;  %5069 = vmatpush3.msk.msra.mxu1 %vm579_vm1, %v568_v11  ;;  %v906_v17 = vpop.permute.xlu1 %905  ;;  %v5256_v11 = vpack.c.bf16 %v1528_v8, %v1526_v7  ;;  %v1530_v13 = vld [vmem:[%s7280_s3 + $0xc0] sm:$0xff]  ;;  %v1571_v8 = vld [vmem:[%s7280_s3 + $0x208] sm:$0xff] }
  0x9d   : > { %4672 = vmatpush1.msk.msra.mxu0 %vm579_vm1, %v570_v14  ;;  %5071 = vmatmul.mubr.msk.f32.vlgmr.msra.gmra.mrb[0].mxu1 %vm572_vm0, %v4670_v12  ;;  %v912_v22 = vsel %vm911_vm3, %v906_v17, %v908_v10  ;;  %v1532_v14 = vld [vmem:[%s7280_s3 + $0xd0] sm:$0xff] }
  0x9e   : > { %4673 = vmatmul.mubr.msk.f32.vlgmr.msra.gmra.mrb[0].mxu0 %vm572_vm0, %v4669_v0  ;;  %4678 = vmatprep.subr.msk.mxu0 %vm579_vm1, %v562_v3  ;;  %v910_v16 = vpop.permute.xlu0 %909  ;;  %v1522_v0 = vld [vmem:[%s7280_s3 + $0x80] sm:$0xff]  ;;  %v1527_v3 = vld [vmem:[%s7280_s3 + $0xa8] sm:$0xff]  ;;  %v5260_v17 = vpack.c.bf16 %v1532_v14, %v1530_v13 }
  0x9f   : > { %656 = vmatprep.mubr.f32.mxu0 %v5816_v1  ;;  %4679 = vmatpush1.msk.msra.mxu0 %vm579_vm1, %v553_v2  ;;  %v913_v18 = vsel %vm911_vm3, %v908_v10, %v910_v16  ;;  %v1524_v2 = vld [vmem:[%s7280_s3 + $0x90] sm:$0xff]  ;;  %v1533_v10 = vld [vmem:[%s7280_s3 + $0xd8] sm:$0xff] }
  0xa0   : > { %5073 = vmatprep.subr.msk.mxu1 %vm579_vm1, %v554_v4  ;;  %5075 = vmatprep.mubr.msk.f32.mxu1 %vm572_vm0, %v555_v15  ;;  %v1092_v21 = vpop.permute.xlu1 %1091  ;;  %v5252_v5 = vpack.c.bf16 %v1524_v2, %v1522_v0  ;;  %v1567_v0 = vld [vmem:[%s7280_s3 + $0x1e8] sm:$0xff]  ;;  %v1569_v2 = vld [vmem:[%s7280_s3 + $0x1f8] sm:$0xff] }
  0xa1   : > { %5074 = vmatpush3.msk.msra.mxu1 %vm579_vm1, %v554_v4  ;;  %4687 = vmatprep.subr.msk.mxu0 %vm579_vm1, %v913_v18  ;;  %v1529_v4 = vld [vmem:[%s7280_s3 + $0xb8] sm:$0xff] }
  0xa2   : > { %4674 = vmatmul.mubr.msk.f32.gmra.mrb[2].mxu0 %vm572_vm0, %v4670_v12  ;;  %5078 = vmatprep.subr.msk.mxu1 %vm579_vm1, %v910_v16  ;;  %v1090_v20 = vpop.permute.xlu0 %1089  ;;  %v5254_v6 = vpack.c.bf16 %v1529_v4, %v1527_v3  ;;  %v5258_v12 = vpack.c.bf16 %v1533_v10, %v1531_v9  ;;  %v5294_v3 = vpack.c.bf16 %v1569_v2, %v1567_v0  ;;  %v1566_v4 = vld [vmem:[%s7280_s3 + $0x1e0] sm:$0xff]  ;;  %v1573_v9 = vld [vmem:[%s7280_s3 + $0x218] sm:$0xff] }
  0xa3   : > { %814 = vmatprep.mubr.f32.mxu0 %v5816_v1  ;;  %v1095_v24 = vsel %vm1093_vm4, %v1090_v20, %v1092_v21 }
  0xa4   : > { %v1272_v28 = vpop.permute.xlu1 %1271 }
  0xa5   : > { %5076 = vmatmul.mubr.msk.f32.vlgmr.msra.gmra.mrb[0].mxu1 %vm572_vm0, %v556_v19 }
  0xa6   : > { %4680 = vmatmul.mubr.msk.f32.vlgmr.msra.gmra.mrb[0].mxu0 %vm572_vm0, %v555_v15  ;;  %5079 = vmatpush3.msk.msra.mxu1 %vm579_vm1, %v910_v16  ;;  %v1088_v25 = vpop.permute.xlu0 %1087  ;;  %v1535_v15 = vld [vmem:[%s7280_s3 + $0xe8] sm:$0xff]  ;;  %v1537_v16 = vld [vmem:[%s7280_s3 + $0xf8] sm:$0xff] }
  0xa7   : > { %4688 = vmatpush1.msk.msra.mxu0 %vm579_vm1, %v912_v22  ;;  %820 = vmatprep.mubr.f32.mxu0 %v5816_v1  ;;  %v1094_v29 = vsel %vm1093_vm4, %v1088_v25, %v1090_v20  ;;  %v5262_v18 = vpack.c.bf16 %v1537_v16, %v1535_v15  ;;  %v1536_v20 = vld [vmem:[%s7280_s3 + $0xf0] sm:$0xff]  ;;  %v1541_v22 = vld [vmem:[%s7280_s3 + $0x118] sm:$0xff]  ;;  %v1538_v25 = vld [vmem:[%s7280_s3 + $0x100] sm:$0xff] }
  0xa8   : > { %5080 = vmatprep.mubr.msk.f32.mxu1 %vm572_vm0, %v4685_v23  ;;  %4696 = vmatprep.subr.msk.mxu0 %vm579_vm1, %v1095_v24  ;;  %v1270_v32 = vpop.permute.xlu1 %1269 }
  0xa9   : > { %5083 = vmatprep.subr.msk.mxu1 %vm579_vm1, %v1092_v21  ;;  %v1276_v34 = vsel %vm1275_vm5, %v1270_v32, %v1272_v28  ;;  %v1544_v32 = vld [vmem:[%s7280_s3 + $0x130] sm:$0xff] }
  0xaa   : > { %4681 = vmatmul.mubr.msk.f32.gmra.mrb[2].mxu0 %vm572_vm0, %v556_v19  ;;  %v1274_v27 = vpop.permute.xlu0 %1273  ;;  %v1534_v19 = vld [vmem:[%s7280_s3 + $0xe0] sm:$0xff] }
  0xab   : > { %990 = vmatprep.mubr.f32.mxu0 %v5816_v1  ;;  %v1277_v31 = vsel %vm1275_vm5, %v1272_v28, %v1274_v27  ;;  %v1545_v28 = vld [vmem:[%s7280_s3 + $0x138] sm:$0xff] }
  0xad   : > { %5081 = vmatmul.mubr.msk.f32.vlgmr.msra.gmra.mrb[0].mxu1 %vm572_vm0, %v4686_v26 }
  0xae   : > { %4689 = vmatmul.mubr.msk.f32.vlgmr.msra.gmra.mrb[0].mxu0 %vm572_vm0, %v4685_v23  ;;  %5084 = vmatpush3.msk.msra.mxu1 %vm579_vm1, %v1092_v21  ;;  %v1539_v21 = vld [vmem:[%s7280_s3 + $0x108] sm:$0xff]  ;;  %v5264_v23 = vpack.c.bf16 %v1536_v20, %v1534_v19 }
  0xaf   : > { %4697 = vmatpush1.msk.msra.mxu0 %vm579_vm1, %v1094_v29  ;;  %996 = vmatprep.mubr.f32.mxu0 %v5816_v1  ;;  %v5266_v24 = vpack.c.bf16 %v1541_v22, %v1539_v21 }
  0xb0   : > { %5085 = vmatprep.mubr.msk.f32.mxu1 %vm572_vm0, %v4694_v30  ;;  %4705 = vmatprep.subr.msk.mxu0 %vm579_vm1, %v1277_v31  ;;  %v1542_v31 = vld [vmem:[%s7280_s3 + $0x120] sm:$0xff] }
  0xb1   : > { %5088 = vmatprep.subr.msk.mxu1 %vm579_vm1, %v1274_v27 }
  0xb2   : > { %4690 = vmatmul.mubr.msk.f32.gmra.mrb[2].mxu0 %vm572_vm0, %v4686_v26  ;;  %v1540_v26 = vld [vmem:[%s7280_s3 + $0x110] sm:$0xff] }
  0xb3   : > { %1172 = vmatprep.mubr.f32.mxu0 %v5816_v1  ;;  %v5268_v29 = vpack.c.bf16 %v1540_v26, %v1538_v25 }
  0xb5   : > { %5086 = vmatmul.mubr.msk.f32.vlgmr.msra.gmra.mrb[0].mxu1 %vm572_vm0, %v4695_v33 }
  0xb6   : > { %4698 = vmatmul.mubr.msk.f32.vlgmr.msra.gmra.mrb[0].mxu0 %vm572_vm0, %v4694_v30  ;;  %5089 = vmatpush3.msk.msra.mxu1 %vm579_vm1, %v1274_v27  ;;  %v1543_v27 = vld [vmem:[%s7280_s3 + $0x128] sm:$0xff] }
  0xb7   : > { %4706 = vmatpush1.msk.msra.mxu0 %vm579_vm1, %v1276_v34  ;;  %1178 = vmatprep.mubr.f32.mxu0 %v5816_v1  ;;  %v5270_v30 = vpack.c.bf16 %v1545_v28, %v1543_v27  ;;  %v1549_v34 = vld [vmem:[%s7280_s3 + $0x158] sm:$0xff]  ;;  %vm3587_vm1 = vcmask 269312  }
  0xb8   : > { %5090 = vmatprep.mubr.msk.f32.mxu1 %vm572_vm0, %v4703_v35  ;;  %5235 = vmatprep.subr.bf16.mxu1 %v5234_v40  ;;  %v1553_v40 = vld [vmem:[%s7280_s3 + $0x178] sm:$0xff] }
  0xb9   : > { %v5278_v42 = vpack.c.bf16 %v1553_v40, %v1551_v39  ;;  %v1458_v10 = vpop.permute.xlu1 %1457  ;;  %v1577_v39 = vld [vmem:[%s7280_s3 + $0x238] sm:$0x7f] }
  0xba   : > { %4699 = vmatmul.mubr.msk.f32.gmra.mrb[2].mxu0 %vm572_vm0, %v4695_v33  ;;  %v1547_v33 = vld [vmem:[%s7280_s3 + $0x148] sm:$0xff] }
  0xbb   : > { %1354 = vmatprep.mubr.f32.mxu0 %v5816_v1  ;;  %v1453_v7 = vpop.permute.xlu0 %1452 }
  0xbd   : > { %5091 = vmatmul.mubr.msk.f32.vlgmr.msra.gmra.mrb[0].mxu1 %vm572_vm0, %v4704_v36 }
  0xbe   : > { %4707 = vmatmul.mubr.msk.f32.vlgmr.msra.gmra.mrb[0].mxu0 %vm572_vm0, %v4703_v35  ;;  %5237 = vmatpush1.bf16.msra.mxu1 %v5236_v44  ;;  %v5272_v35 = vpack.c.bf16 %v1544_v32, %v1542_v31  ;;  %v1552_v44 = vld [vmem:[%s7280_s3 + $0x170] sm:$0xff] }
  0xbf   : > { %1360 = vmatprep.mubr.f32.mxu0 %v5816_v1  ;;  %5239 = vmatprep.subr.bf16.mxu1 %v5238_v45  ;;  %v1555_v45 = vld [vmem:[%s7280_s3 + $0x188] sm:$0xff]  ;;  %v5280_v47 = vpack.c.bf16 %v1552_v44, %v1550_v43 }
  0xc0   : > { %v5282_v48 = vpack.c.bf16 %v1557_v46, %v1555_v45 }
  0xc2   : > { %4708 = vmatmul.mubr.msk.f32.gmra.mrb[2].mxu0 %vm572_vm0, %v4704_v36  ;;  %5241 = vmatpush1.bf16.msra.mxu1 %v5240_v50  ;;  %v5274_v36 = vpack.c.bf16 %v1549_v34, %v1547_v33  ;;  %v1556_v50 = vld [vmem:[%s7280_s3 + $0x190] sm:$0xff]  ;;  %vm3443_vm0 = vcmask 531456  }
  0xc3   : > { %1850 = vmatprep.mubr.f32.mxu0 %v5816_v1  ;;  %5243 = vmatprep.subr.bf16.mxu1 %v5242_v51  ;;  %v1559_v51 = vld [vmem:[%s7280_s3 + $0x1a8] sm:$0xff]  ;;  %v5284_v53 = vpack.c.bf16 %v1556_v50, %v1554_v49  ;;  %v1574_v49 = vld [vmem:[%s7280_s3 + $0x220] sm:$0xff]  ;;  %v1576_v50 = vld [vmem:[%s7280_s3 + $0x230] sm:$0x7f] }
  0xc4   : > { %v5286_v54 = vpack.c.bf16 %v1561_v52, %v1559_v51 }
  0xc6   : > { %5245 = vmatpush1.bf16.msra.mxu1 %v5244_v56  ;;  %v1560_v56 = vld [vmem:[%s7280_s3 + $0x1b0] sm:$0xff] }
  0xc7   : > { %5247 = vmatprep.subr.bf16.mxu1 %v5246_v57  ;;  %v5288_v57 = vpack.c.bf16 %v1560_v56, %v1558_v55  ;;  %v5305_v56 = vpack.c.bf16 %v1576_v50, %v1574_v49 }
  0xca   : > { %5249 = vmatpush1.bf16.msra.mxu1 %v5248_v62  ;;  %v1564_v62 = vld [vmem:[%s7280_s3 + $0x1d0] sm:$0xff] }
  0xcb   : > { %5251 = vmatprep.subr.bf16.mxu1 %v5250_v63  ;;  %v5292_v63 = vpack.c.bf16 %v1564_v62, %v1562_v61 }
  0xce   : > { %5253 = vmatpush1.bf16.msra.mxu1 %v5252_v5  ;;  %v1568_v5 = vld [vmem:[%s7280_s3 + $0x1f0] sm:$0xff] }
  0xcf   : > { %5255 = vmatprep.subr.bf16.mxu1 %v5254_v6  ;;  %v5296_v6 = vpack.c.bf16 %v1568_v5, %v1566_v4  ;;  %v2360_v4 = vld [vmem:[%s7245_s5] sm:$0xff]  ;;  %v2362_v5 = vld [vmem:[%s7245_s5 + $0x10] sm:$0xff] }
  0xd2   : > { %5257 = vmatpush1.bf16.msra.mxu1 %v5256_v11 }
  0xd3   : > { %5259 = vmatprep.subr.bf16.mxu1 %v5258_v12  ;;  %v5298_v12 = vpack.c.bf16 %v1573_v9, %v1571_v8 }
  0xd6   : > { %5261 = vmatpush1.bf16.msra.mxu1 %v5260_v17 }
  0xd7   : > { %5263 = vmatprep.subr.bf16.mxu1 %v5262_v18 }
  0xda   : > { %5265 = vmatpush1.bf16.msra.mxu1 %v5264_v23 }
  0xdb   : > { %5267 = vmatprep.subr.bf16.mxu1 %v5266_v24 }
  0xde   : > { %5269 = vmatpush1.bf16.msra.mxu1 %v5268_v29 }
  0xdf   : > { %5271 = vmatprep.subr.bf16.mxu1 %v5270_v30 }
  0xe2   : > { %5273 = vmatpush1.bf16.msra.mxu1 %v5272_v35 }
  0xe3   : > { %5275 = vmatprep.subr.bf16.mxu1 %v5274_v36  ;;  %v1570_v36 = vld [vmem:[%s7280_s3 + $0x200] sm:$0xff] }
  0xe4   : > { %v5300_v45 = vpack.c.bf16 %v1572_v37, %v1570_v36 }
  0xe6   : > { %5277 = vmatpush1.bf16.msra.mxu1 %v5276_v41 }
  0xe7   : > { %5279 = vmatprep.subr.bf16.mxu1 %v5278_v42 }
  0xea   : > { %5281 = vmatpush1.bf16.msra.mxu1 %v5280_v47 }
  0xeb   : > { %5283 = vmatprep.subr.bf16.mxu1 %v5282_v48  ;;  %v5302_v48 = vpack.c.bf16 %v1577_v39, %v1575_v38  ;;  %v1747_v38 = vld [vmem:[%s7244_s4 + $0x8] sm:$0xff]  ;;  %v1748_v39 = vld [vmem:[%s7244_s4 + $0x10] sm:$0xff] }
  0xee   : > { %5285 = vmatpush1.bf16.msra.mxu1 %v5284_v53 }
  0xef   : > { %5287 = vmatprep.subr.bf16.mxu1 %v5286_v54 }
  0xf2   : > { %5289 = vmatpush1.bf16.msra.mxu1 %v5288_v57 }
  0xf3   : > { %5291 = vmatprep.subr.bf16.mxu1 %v5290_v60 }
  0xf6   : > { %5293 = vmatpush1.bf16.msra.mxu1 %v5292_v63 }
  0xf7   : > { %5295 = vmatprep.subr.bf16.mxu1 %v5294_v3 }
  0xfa   : > { %5297 = vmatpush1.bf16.msra.mxu1 %v5296_v6  ;;  %v2361_v6 = vld [vmem:[%s7245_s5 + $0x8] sm:$0xff] }
  0xfb   : > { %5299 = vmatprep.subr.bf16.mxu1 %v5298_v12 }
 0x190   : > { %v5092_v11 = vpop.f32.mrb[0].mxu1 }
 0x191   : > { %v1356_v13 = vpop.f32.mrb[0].mxu0  ;;  %v1433_v14 = vpop.f32.mrb[1].mxu1  ;;  %v1465_v19 = vadd.f32 %v5092_v11, %v1458_v10 }
 0x192   : > { %v1460_v15 = vadd.f32 %v1453_v7, %v1356_v13  ;;  %v1462_v16 = vadd.f32 %v1453_v7, %v1433_v14  ;;  %v1358_v17 = vpop.f32.mrb[1].mxu0 }
 0x193   : > { %v1461_v18 = vadd.f32 %v1453_v7, %v1358_v17  ;;  %v1471_v28 = vmax.f32 %v1465_v19, 0.0  ;;  %v2363_v7 = vld [vmem:[%s7245_s5 + $0x18] sm:$0xff] }
 0x194   : > { %v1466_v20 = vmax.f32 %v1460_v15, 0.0  ;;  %v1468_v21 = vmax.f32 %v1462_v16, 0.0 }
 0x195   : > { %v1467_v22 = vmax.f32 %v1461_v18, 0.0  ;;  %v1362_v23 = vpop.f32.mrb[2].mxu0 }
 0x196   : > { %v1463_v24 = vadd.f32 %v1458_v10, %v1362_v23  ;;  %v1364_v25 = vpop.f32.mrb[3].mxu0  ;;  %1482 = vrot.lane.b32.xlu0 %v1468_v21, %s7281_s28 }
 0x197   : > { %v5657_v26 = vpack.i.bf16 %v1466_v20, %v1467_v22  ;;  %v1464_v27 = vadd.f32 %v1458_v10, %v1364_v25  ;;  %v4718_v25 = vld [vmem:[%s7244_s4 + $0x30] sm:$0xff] }
 0x198   : > { %v1469_v29 = vmax.f32 %v1463_v24, 0.0  ;;  %v4717_v24 = vld [vmem:[%s7244_s4 + $0x28] sm:$0xff] }
 0x199   : > { %v1470_v30 = vmax.f32 %v1464_v27, 0.0  ;;  %5658 = vrot.lane.b32.xlu1 %v5657_v26, %s7281_s28 }
 0x19a   : > { %1488 = vrot.lane.b32.xlu0 %v1471_v28, %s7281_s28 }
 0x19b   : > { %v5662_v31 = vpack.i.bf16 %v1469_v29, %v1470_v30 }
 0x19d   : > { %5663 = vrot.lane.b32.xlu1 %v5662_v31, %s7281_s28 }
 0x208   : > { %v1483_v32 = vpop.permute.xlu0 %1482 }
 0x209   : > { %v1502_v57 = vmax.f32 %v1468_v21, %v1483_v32  ;;  %v4716_v21 = vld [vmem:[%s7244_s4 + $0x20] sm:$0xff] }
 0x20b   : > { %v5659_v33 = vpop.permute.xlu1 %5658 }
 0x20c   : > { %v5661_v34 = vunpack.i.h.bf16 %v5659_v33  ;;  %v5660_v35 = vunpack.i.l.bf16 %v5659_v33  ;;  %v1489_v51 = vpop.permute.xlu0 %1488  ;;  %v1746_v33 = vld [vmem:[%s7244_s4] sm:$0xff] }
 0x20d   : > { %v1505_v58 = vmax.f32 %v1471_v28, %v1489_v51  ;;  %v4719_v28 = vld [vmem:[%s7244_s4 + $0x38] sm:$0xff] }
 0x20e   : > { %v1490_v40 = vsel %vm569_vm2, %v5661_v34, %v5660_v35  ;;  %v1491_v41 = vsel %vm569_vm2, %v5660_v35, %v1483_v32 }
 0x20f   : > { %v1500_v42 = vmax.f32 %v1466_v20, %v1490_v40  ;;  %v5664_v43 = vpop.permute.xlu1 %5663  ;;  %v1501_v44 = vmax.f32 %v1467_v22, %v1491_v41 }
 0x210   : > { %v5666_v46 = vunpack.i.h.bf16 %v5664_v43  ;;  %v5665_v47 = vunpack.i.l.bf16 %v5664_v43 }
 0x211   : > { %1656 = vmatprep.mubr.f32.mxu1 %v1501_v44 }
 0x212   : > { %1657 = vmatmul.mubr.f32.vlgmr.msra.gmra.mrb[2].mxu1 %v1500_v42  ;;  %v1493_v52 = vsel %vm569_vm2, %v5665_v47, %v1489_v51  ;;  %v1492_v53 = vsel %vm569_vm2, %v5666_v46, %v5665_v47  ;;  %v1749_v42 = vld [vmem:[%s7244_s4 + $0x18] sm:$0xff]  ;;  %v4728_v47 = vld [vmem:[%s7244_s4 + $0x40] sm:$0xff] }
 0x213   : > { %5301 = vmatpush1.bf16.msra.mxu1 %v5300_v45  ;;  %v1504_v54 = vmax.f32 %v1470_v30, %v1493_v52  ;;  %v1503_v55 = vmax.f32 %v1469_v29, %v1492_v53  ;;  %v4729_v52 = vld [vmem:[%s7244_s4 + $0x48] sm:$0xff]  ;;  %v4730_v53 = vld [vmem:[%s7244_s4 + $0x50] sm:$0xff] }
 0x214   : > { %5304 = vmatprep.subr.msk.bf16.mxu1 %vm5303_vm8, %v5302_v48 }
 0x215   : > { %1662 = vmatprep.mubr.f32.mxu1 %v1504_v54 }
 0x216   : > { %1663 = vmatmul.mubr.f32.gmra.mrb[4].mxu1 %v1503_v55  ;;  %v4731_v55 = vld [vmem:[%s7244_s4 + $0x58] sm:$0xff] }
 0x217   : > { %5307 = vmatpush1.bf16.msk.msra.mxu1 %vm5303_vm8, %v5305_v56  ;;  %1733 = vmatprep.mubr.f32.mxu1 %v5816_v1 }
 0x21a   : > { %4714 = vmatmul.mubr.msk.f32.vlgmr.msra.gmra.mrb[2].mxu1 %vm1578_vm9, %v1502_v57 }
 0x21b   : > { %1739 = vmatprep.mubr.f32.mxu1 %v5816_v1 }
 0x21e   : > { %4715 = vmatmul.mubr.msk.f32.gmra.mrb[4].mxu1 %vm1578_vm9, %v1505_v58  ;;  %v4736_v58 = vld [vmem:[%s7244_s4 + $0x60] sm:$0xff] }
 0x2ed   : > { %v1735_v59 = vpop.f32.mrb[2].mxu1 }
 0x2ee   : > { %v1737_v60 = vpop.f32.mrb[3].mxu1 }
 0x2ef   : > { %v5667_v61 = vpack.i.bf16 %v1737_v60, %v1735_v59 }
 0x2f1   : > { %5668 = vrot.lane.b32.xlu1 %v5667_v61, %s7281_s28  ;;  %v1741_v62 = vpop.f32.mrb[4].mxu1 }
 0x2f2   : > { %v1743_v63 = vpop.f32.mrb[5].mxu1  ;;  %v5314_v0 = vpack.c.bf16 %v1741_v62, %v1735_v59 }
 0x2f3   : > { %v5672_v2 = vpack.i.bf16 %v1743_v63, %v1741_v62  ;;  %v5312_v3 = vpack.c.bf16 %v1743_v63, %v1737_v60  ;;  %v4738_v62 = vld [vmem:[%s7244_s4 + $0x70] sm:$0xff]  ;;  %v4739_v63 = vld [vmem:[%s7244_s4 + $0x78] sm:$0xff] }
 0x2f5   : > { %5678 = vrot.lane.b32.xlu1 %v5667_v61, %s7282_s20  ;;  %5673 = vrot.lane.b32.xlu0 %v5672_v2, %s7281_s28 }
 0x2f9   : > { %5688 = vrot.lane.b32.xlu1 %v5667_v61, %s7283_s30  ;;  %5683 = vrot.lane.b32.xlu0 %v5672_v2, %s7282_s20 }
 0x2fd   : > { %5698 = vrot.lane.b32.xlu1 %v5667_v61, %s7284_s18  ;;  %5693 = vrot.lane.b32.xlu0 %v5672_v2, %s7283_s30  ;;  %v4737_v61 = vld [vmem:[%s7244_s4 + $0x68] sm:$0xff] }
 0x301   : > { %2366 = vperm.xlu1 %5656, %v2360_v4   ;;  %5703 = vrot.lane.b32.xlu0 %v5672_v2, %s7284_s18  ;;  %v4745_v2 = vld [vmem:[%s7244_s4 + $0x88] sm:$0xff]  ;;  %v4747_v4 = vld [vmem:[%s7244_s4 + $0x98] sm:$0xff] }
 0x305   : > { %2376 = vperm.xlu1 %5656, %v2362_v5   ;;  %2371 = vperm.xlu0 %5655, %v2361_v6   ;;  %v2444_v5 = vld [vmem:[%s7246_s6] sm:$0xff]  ;;  %v2445_v6 = vld [vmem:[%s7246_s6 + $0x8] sm:$0xff] }
 0x309   : > { %2381 = vperm.xlu0 %5655, %v2363_v7   ;;  %v2446_v7 = vld [vmem:[%s7246_s6 + $0x10] sm:$0xff] }
 0x363   : > { %v5669_v8 = vpop.permute.xlu1 %5668 }
 0x364   : > { %v5671_v9 = vunpack.i.h.bf16 %v5669_v8  ;;  %v5670_v10 = vunpack.i.l.bf16 %v5669_v8  ;;  %v5823_v8 = vmov 0.0|0.0  }
 0x365   : > { %5328 = vmatprep.subr.bf16.mxu1 %v5823_v8 }
 0x366   : > { %v1767_v14 = vsel %vm569_vm2, %v5670_v10, %v5671_v9  ;;  %v2447_v10 = vld [vmem:[%s7246_s6 + $0x18] sm:$0xff] }
 0x367   : > { %v5674_v11 = vpop.permute.xlu0 %5673  ;;  %v5679_v17 = vpop.permute.xlu1 %5678 }
 0x368   : > { %v5676_v12 = vunpack.i.h.bf16 %v5674_v11  ;;  %v5675_v13 = vunpack.i.l.bf16 %v5674_v11  ;;  %v5681_v22 = vunpack.i.h.bf16 %v5679_v17  ;;  %v5680_v29 = vunpack.i.l.bf16 %v5679_v17 }
 0x369   : > { %v5332_v11 = vpack.c.bf16 %v2447_v10, %v2446_v7 }
 0x36a   : > { %v5308_v15 = vpack.c.bf16 %v5676_v12, %v5671_v9  ;;  %v1768_v16 = vsel %vm569_vm2, %v5675_v13, %v5676_v12  ;;  %v1989_v34 = vsel %vm911_vm3, %v5680_v29, %v5681_v22  ;;  %v5329_v9 = vpack.c.bf16 %v2445_v6, %v2444_v5  ;;  %v2448_v12 = vld [vmem:[%s7246_s6 + $0x20] sm:$0xff]  ;;  %v2449_v13 = vld [vmem:[%s7246_s6 + $0x28] sm:$0xff] }
 0x36b   : > { %v5310_v18 = vpack.c.bf16 %v1768_v16, %v1767_v14  ;;  %v5684_v19 = vpop.permute.xlu0 %5683  ;;  %v5689_v30 = vpop.permute.xlu1 %5688  ;;  %v5335_v14 = vpack.c.bf16 %v2449_v13, %v2448_v12  ;;  %v2451_v16 = vld [vmem:[%s7246_s6 + $0x38] sm:$0xff] }
 0x36c   : > { %v5686_v20 = vunpack.i.h.bf16 %v5684_v19  ;;  %5309 = vmatprep.subr.bf16.mxu0 %v5308_v15  ;;  %v5685_v26 = vunpack.i.l.bf16 %v5684_v19  ;;  %v5691_v35 = vunpack.i.h.bf16 %v5689_v30  ;;  %v5690_v43 = vunpack.i.l.bf16 %v5689_v30  ;;  %5330 = vmatpush1.bf16.msra.mxu1 %v5329_v9  ;;  %v2450_v15 = vld [vmem:[%s7246_s6 + $0x30] sm:$0xff]  ;;  %v2453_v19 = vld [vmem:[%s7246_s6 + $0x48] sm:$0xff]  ;;  %v2460_v30 = vld [vmem:[%s7246_s6 + $0x80] sm:$0xff] }
 0x36d   : > { %5311 = vmatpush1.bf16.msra.mxu0 %v5310_v18  ;;  %5331 = vmatprep.subr.bf16.mxu1 %v5823_v8  ;;  %v5338_v17 = vpack.c.bf16 %v2451_v16, %v2450_v15  ;;  %v2452_v18 = vld [vmem:[%s7246_s6 + $0x40] sm:$0xff] }
 0x36e   : > { %5313 = vmatprep.subr.bf16.mxu0 %v5312_v3  ;;  %v5316_v23 = vpack.c.bf16 %v5686_v20, %v5681_v22  ;;  %v1990_v31 = vsel %vm911_vm3, %v5685_v26, %v5686_v20  ;;  %v2117_v48 = vsel %vm1093_vm4, %v5690_v43, %v5691_v35  ;;  %v4746_v3 = vld [vmem:[%s7244_s4 + $0x90] sm:$0xff]  ;;  %v5341_v20 = vpack.c.bf16 %v2453_v19, %v2452_v18  ;;  %v2455_v22 = vld [vmem:[%s7246_s6 + $0x58] sm:$0xff] }
 0x36f   : > { %v5694_v27 = vpop.permute.xlu0 %5693  ;;  %v5318_v36 = vpack.c.bf16 %v1990_v31, %v1989_v34  ;;  %v5699_v44 = vpop.permute.xlu1 %5698  ;;  %v2461_v31 = vld [vmem:[%s7246_s6 + $0x88] sm:$0x7]  ;;  %vm4583_vm3 = vcmask 8192  }
 0x370   : > { %4720 = vmatmul.mubr.msk.f32.vlgmr.msra.gmra.mrb[4].mxu0 %vm1773_vm10, %v4716_v21  ;;  %v5696_v32 = vunpack.i.h.bf16 %v5694_v27  ;;  %v5695_v40 = vunpack.i.l.bf16 %v5694_v27  ;;  %v5701_v49 = vunpack.i.h.bf16 %v5699_v44  ;;  %v5700_v56 = vunpack.i.l.bf16 %v5699_v44  ;;  %5333 = vmatpush1.bf16.msra.mxu1 %v5332_v11  ;;  %v2454_v21 = vld [vmem:[%s7246_s6 + $0x50] sm:$0xff] }
 0x371   : > { %5315 = vmatpush1.bf16.msra.mxu0 %v5314_v0  ;;  %1856 = vmatprep.mubr.f32.mxu0 %v5816_v1  ;;  %v4744_v0 = vld [vmem:[%s7244_s4 + $0x80] sm:$0xff]  ;;  %v2458_v27 = vld [vmem:[%s7246_s6 + $0x70] sm:$0xff] }
 0x372   : > { %5317 = vmatprep.subr.bf16.mxu0 %v5316_v23  ;;  %v5320_v37 = vpack.c.bf16 %v5696_v32, %v5691_v35  ;;  %v2118_v45 = vsel %vm1093_vm4, %v5695_v40, %v5696_v32  ;;  %v2245_v59 = vsel %vm1275_vm5, %v5700_v56, %v5701_v49  ;;  %5334 = vmatprep.subr.bf16.mxu1 %v5823_v8 }
 0x373   : > { %v5704_v41 = vpop.permute.xlu0 %5703  ;;  %v5322_v50 = vpack.c.bf16 %v2118_v45, %v2117_v48  ;;  %v5344_v23 = vpack.c.bf16 %v2455_v22, %v2454_v21  ;;  %v5353_v32 = vpack.c.bf16 %v2461_v31, %v2460_v30 }
 0x374   : > { %4721 = vmatmul.mubr.msk.f32.gmra.mrb[6].mxu0 %vm1773_vm10, %v4717_v24  ;;  %v5706_v46 = vunpack.i.h.bf16 %v5704_v41  ;;  %v5705_v54 = vunpack.i.l.bf16 %v5704_v41  ;;  %5336 = vmatpush1.bf16.msra.mxu1 %v5335_v14  ;;  %v2456_v24 = vld [vmem:[%s7246_s6 + $0x60] sm:$0xff] }
 0x375   : > { %1862 = vmatprep.mubr.f32.mxu0 %v5816_v1  ;;  %5337 = vmatprep.subr.bf16.mxu1 %v5823_v8 }
 0x376   : > { %v5324_v51 = vpack.c.bf16 %v5706_v46, %v5701_v49  ;;  %v2246_v57 = vsel %vm1275_vm5, %v5705_v54, %v5706_v46 }
 0x377   : > { %v5326_v60 = vpack.c.bf16 %v2246_v57, %v2245_v59 }
 0x378   : > { %4722 = vmatmul.mubr.msk.f32.gmra.mrb[8].mxu0 %vm1773_vm10, %v4718_v25  ;;  %5339 = vmatpush1.bf16.msra.mxu1 %v5338_v17  ;;  %v2457_v25 = vld [vmem:[%s7246_s6 + $0x68] sm:$0xff] }
 0x379   : > { %1868 = vmatprep.mubr.f32.mxu0 %v5816_v1  ;;  %5340 = vmatprep.subr.bf16.mxu1 %v5823_v8  ;;  %v5347_v26 = vpack.c.bf16 %v2457_v25, %v2456_v24 }
 0x37c   : > { %4723 = vmatmul.mubr.msk.f32.gmra.mrb[10].mxu0 %vm1773_vm10, %v4719_v28  ;;  %5342 = vmatpush1.bf16.msra.mxu1 %v5341_v20  ;;  %v2459_v28 = vld [vmem:[%s7246_s6 + $0x78] sm:$0xff] }
 0x37d   : > { %1951 = vmatprep.mubr.f32.mxu0 %v5816_v1  ;;  %5343 = vmatprep.subr.bf16.mxu1 %v5823_v8  ;;  %v5350_v29 = vpack.c.bf16 %v2459_v28, %v2458_v27 }
 0x380   : > { %4724 = vmatmul.mubr.msk.f32.vlgmr.msra.gmra.mrb[4].mxu0 %vm1773_vm10, %v1746_v33  ;;  %5345 = vmatpush1.bf16.msra.mxu1 %v5344_v23  ;;  %v2367_v33 = vpop.permute.xlu1 %2366 }
 0x381   : > { %5319 = vmatpush1.bf16.msra.mxu0 %v5318_v36  ;;  %1957 = vmatprep.mubr.f32.mxu0 %v5816_v1 }
 0x382   : > { %5321 = vmatprep.subr.bf16.mxu0 %v5320_v37  ;;  %5346 = vmatprep.subr.bf16.mxu1 %v5823_v8 }
 0x384   : > { %4725 = vmatmul.mubr.msk.f32.gmra.mrb[6].mxu0 %vm1773_vm10, %v1747_v38  ;;  %5348 = vmatpush1.bf16.msra.mxu1 %v5347_v26  ;;  %v2377_v46 = vpop.permute.xlu1 %2376  ;;  %v4757_v26 = vld [vmem:[%s7247_s7 + $0x40] sm:$0xff] }
 0x385   : > { %1963 = vmatprep.mubr.f32.mxu0 %v5816_v1  ;;  %5349 = vmatprep.subr.bf16.mxu1 %v5823_v8 }
 0x388   : > { %4726 = vmatmul.mubr.msk.f32.gmra.mrb[8].mxu0 %vm1773_vm10, %v1748_v39  ;;  %5351 = vmatpush1.bf16.msra.mxu1 %v5350_v29  ;;  %v2372_v39 = vpop.permute.xlu0 %2371 }
 0x389   : > { %1969 = vmatprep.mubr.f32.mxu0 %v5816_v1  ;;  %5352 = vmatprep.subr.bf16.mxu1 %v5823_v8 }
 0x38c   : > { %4727 = vmatmul.mubr.msk.f32.gmra.mrb[10].mxu0 %vm1773_vm10, %v1749_v42  ;;  %5355 = vmatpush1.bf16.msk.msra.mxu1 %vm5354_vm12, %v5353_v32  ;;  %v3330_v32 = vld [vmem:[%s7248_s8] sm:$0xff] }
 0x38d   : > { %2071 = vmatprep.mubr.f32.mxu0 %v5816_v1 }
 0x390   : > { %4732 = vmatmul.mubr.msk.f32.vlgmr.msra.gmra.mrb[4].mxu0 %vm1773_vm10, %v4728_v47 }
 0x391   : > { %5323 = vmatpush1.bf16.msra.mxu0 %v5322_v50  ;;  %2077 = vmatprep.mubr.f32.mxu0 %v5816_v1 }
 0x392   : > { %5325 = vmatprep.subr.bf16.mxu0 %v5324_v51 }
 0x394   : > { %4733 = vmatmul.mubr.msk.f32.gmra.mrb[6].mxu0 %vm1773_vm10, %v4729_v52 }
 0x395   : > { %2083 = vmatprep.mubr.f32.mxu0 %v5816_v1 }
 0x398   : > { %4734 = vmatmul.mubr.msk.f32.gmra.mrb[8].mxu0 %vm1773_vm10, %v4730_v53  ;;  %v2382_v53 = vpop.permute.xlu0 %2381 }
 0x399   : > { %2089 = vmatprep.mubr.f32.mxu0 %v5816_v1 }
 0x39c   : > { %4735 = vmatmul.mubr.msk.f32.gmra.mrb[10].mxu0 %vm1773_vm10, %v4731_v55 }
 0x39d   : > { %2199 = vmatprep.mubr.f32.mxu0 %v5816_v1 }
 0x3a0   : > { %4740 = vmatmul.mubr.msk.f32.vlgmr.msra.gmra.mrb[4].mxu0 %vm1773_vm10, %v4736_v58 }
 0x3a1   : > { %5327 = vmatpush1.bf16.msra.mxu0 %v5326_v60  ;;  %2205 = vmatprep.mubr.f32.mxu0 %v5816_v1 }
 0x3a4   : > { %4741 = vmatmul.mubr.msk.f32.gmra.mrb[6].mxu0 %vm1773_vm10, %v4737_v61 }
 0x3a5   : > { %2211 = vmatprep.mubr.f32.mxu0 %v5816_v1 }
 0x3a8   : > { %4742 = vmatmul.mubr.msk.f32.gmra.mrb[8].mxu0 %vm1773_vm10, %v4738_v62 }
 0x3a9   : > { %2217 = vmatprep.mubr.f32.mxu0 %v5816_v1 }
 0x3ac   : > { %4743 = vmatmul.mubr.msk.f32.gmra.mrb[10].mxu0 %vm1773_vm10, %v4739_v63 }
 0x3ad   : > { %2327 = vmatprep.mubr.f32.mxu0 %v5816_v1 }
 0x3b0   : > { %4748 = vmatmul.mubr.msk.f32.vlgmr.msra.gmra.mrb[4].mxu0 %vm1773_vm10, %v4744_v0 }
 0x3b1   : > { %2333 = vmatprep.mubr.f32.mxu0 %v5816_v1 }
 0x3b4   : > { %4749 = vmatmul.mubr.msk.f32.gmra.mrb[6].mxu0 %vm1773_vm10, %v4745_v2 }
 0x3b5   : > { %2339 = vmatprep.mubr.f32.mxu0 %v5816_v1 }
 0x3b8   : > { %4750 = vmatmul.mubr.msk.f32.gmra.mrb[8].mxu0 %vm1773_vm10, %v4746_v3 }
 0x3b9   : > { %2345 = vmatprep.mubr.f32.mxu0 %v5816_v1 }
 0x3bc   : > { %4751 = vmatmul.mubr.msk.f32.gmra.mrb[10].mxu0 %vm1773_vm10, %v4747_v4 }
 0x3bd   : > { %5101 = vmatprep.mubr.msk.f32.mxu0 %vm2597_vm14, %v4757_v26  ;;  %v4786_v26 = vld [vmem:[%s7247_s7 + $0xa8] sm:$0xff] }
 0x483   : > { %v2329_v34 = vpop.f32.mrb[4].mxu0 }
 0x484   : > { %v2384_v35 = vadd.f32 %v2367_v33, %v2329_v34  ;;  %v2331_v36 = vpop.f32.mrb[5].mxu0  ;;  %v3334_v34 = vld [vmem:[%s7248_s8 + $0x20] sm:$0xff] }
 0x485   : > { %v2385_v37 = vadd.f32 %v2367_v33, %v2331_v36  ;;  %v3332_v33 = vld [vmem:[%s7248_s8 + $0x10] sm:$0xff] }
 0x486   : > { %v2392_v38 = vmax.f32 %v2384_v35, 0.0  ;;  %v3331_v35 = vld [vmem:[%s7248_s8 + $0x8] sm:$0xff]  ;;  %v3336_v36 = vld [vmem:[%s7248_s8 + $0x30] sm:$0xff] }
 0x487   : > { %v2393_v40 = vmax.f32 %v2385_v37, 0.0  ;;  %v2335_v41 = vpop.f32.mrb[6].mxu0  ;;  %v3333_v37 = vld [vmem:[%s7248_s8 + $0x18] sm:$0xff] }
 0x488   : > { %v2386_v42 = vadd.f32 %v2372_v39, %v2335_v41  ;;  %2408 = vrot.lane.b32.xlu1 %v2392_v38, %s7281_s28  ;;  %v2337_v43 = vpop.f32.mrb[7].mxu0 }
 0x489   : > { %v2387_v44 = vadd.f32 %v2372_v39, %v2337_v43  ;;  %2410 = vrot.lane.b32.xlu0 %v2393_v40, %s7281_s28  ;;  %v3337_v39 = vld [vmem:[%s7248_s8 + $0x38] sm:$0xff] }
 0x48a   : > { %v2394_v45 = vmax.f32 %v2386_v42, 0.0 }
 0x48b   : > { %v2395_v47 = vmax.f32 %v2387_v44, 0.0  ;;  %v2341_v48 = vpop.f32.mrb[8].mxu0 }
 0x48c   : > { %v2388_v49 = vadd.f32 %v2377_v46, %v2341_v48  ;;  %2412 = vrot.lane.b32.xlu1 %v2394_v45, %s7281_s28  ;;  %v2343_v50 = vpop.f32.mrb[9].mxu0 }
 0x48d   : > { %v2389_v51 = vadd.f32 %v2377_v46, %v2343_v50  ;;  %2414 = vrot.lane.b32.xlu0 %v2395_v47, %s7281_s28  ;;  %v4759_v50 = vld [vmem:[%s7247_s7 + $0x50] sm:$0xff] }
 0x48e   : > { %v2396_v52 = vmax.f32 %v2388_v49, 0.0  ;;  %v4758_v49 = vld [vmem:[%s7247_s7 + $0x48] sm:$0xff] }
 0x48f   : > { %v2397_v54 = vmax.f32 %v2389_v51, 0.0  ;;  %v2347_v55 = vpop.f32.mrb[10].mxu0 }
 0x490   : > { %v2390_v56 = vadd.f32 %v2382_v53, %v2347_v55  ;;  %2416 = vrot.lane.b32.xlu1 %v2396_v52, %s7281_s28  ;;  %v2349_v57 = vpop.f32.mrb[11].mxu0 }
 0x491   : > { %v2391_v58 = vadd.f32 %v2382_v53, %v2349_v57  ;;  %2418 = vrot.lane.b32.xlu0 %v2397_v54, %s7281_s28  ;;  %v4760_v53 = vld [vmem:[%s7247_s7 + $0x58] sm:$0xff]  ;;  %v4763_v57 = vld [vmem:[%s7247_s7 + $0x70] sm:$0xff] }
 0x492   : > { %v2398_v59 = vmax.f32 %v2390_v56, 0.0  ;;  %v4762_v56 = vld [vmem:[%s7247_s7 + $0x68] sm:$0xff] }
 0x493   : > { %v2399_v60 = vmax.f32 %v2391_v58, 0.0 }
 0x494   : > { %2420 = vrot.lane.b32.xlu1 %v2398_v59, %s7281_s28 }
 0x495   : > { %2422 = vrot.lane.b32.xlu0 %v2399_v60, %s7281_s28 }
 0x4fa   : > { %v2409_v61 = vpop.permute.xlu1 %2408 }
 0x4fb   : > { %v2411_v62 = vpop.permute.xlu0 %2410 }
 0x4fc   : > { %v2424_v63 = vsel %vm569_vm2, %v2409_v61, %v2411_v62  ;;  %v2437_v0 = vmax.f32 %v2393_v40, %v2411_v62 }
 0x4fd   : > { %v2436_v2 = vmax.f32 %v2392_v38, %v2424_v63  ;;  %v3335_v38 = vld [vmem:[%s7248_s8 + $0x28] sm:$0xff] }
 0x4fe   : > { %4753 = vmatprep.mubr.msk.f32.mxu1 %vm2462_vm13, %v2437_v0  ;;  %v2413_v3 = vpop.permute.xlu1 %2412  ;;  %v2565_v0 = vld [vmem:[%s7247_s7 + $0x8] sm:$0xff] }
 0x4ff   : > { %2544 = vmatmul.mubr.f32.vlgmr.msra.gmra.mrb[6].mxu1 %v2436_v2  ;;  %v2415_v4 = vpop.permute.xlu0 %2414  ;;  %v2566_v2 = vld [vmem:[%s7247_s7 + $0x10] sm:$0xff] }
 0x500   : > { %v2425_v5 = vsel %vm569_vm2, %v2413_v3, %v2415_v4  ;;  %v2439_v6 = vmax.f32 %v2395_v47, %v2415_v4 }
 0x501   : > { %v2438_v7 = vmax.f32 %v2394_v45, %v2425_v5 }
 0x502   : > { %4754 = vmatprep.mubr.msk.f32.mxu1 %vm2462_vm13, %v2439_v6  ;;  %v2417_v9 = vpop.permute.xlu1 %2416  ;;  %v2567_v6 = vld [vmem:[%s7247_s7 + $0x18] sm:$0xff] }
 0x503   : > { %2549 = vmatmul.mubr.f32.gmra.mrb[8].mxu1 %v2438_v7  ;;  %v2419_v10 = vpop.permute.xlu0 %2418  ;;  %v2568_v7 = vld [vmem:[%s7247_s7 + $0x20] sm:$0xff] }
 0x504   : > { %v2426_v11 = vsel %vm569_vm2, %v2417_v9, %v2419_v10  ;;  %v2441_v12 = vmax.f32 %v2397_v54, %v2419_v10  ;;  %v4761_v54 = vld [vmem:[%s7247_s7 + $0x60] sm:$0xff]  ;;  %v2569_v10 = vld [vmem:[%s7247_s7 + $0x28] sm:$0xff] }
 0x505   : > { %v2440_v13 = vmax.f32 %v2396_v52, %v2426_v11  ;;  %v2570_v11 = vld [vmem:[%s7247_s7 + $0x30] sm:$0xff] }
 0x506   : > { %4755 = vmatprep.mubr.msk.f32.mxu1 %vm2462_vm13, %v2441_v12  ;;  %v2421_v14 = vpop.permute.xlu1 %2420 }
 0x507   : > { %2554 = vmatmul.mubr.f32.gmra.mrb[10].mxu1 %v2440_v13  ;;  %v2423_v15 = vpop.permute.xlu0 %2422  ;;  %v2571_v13 = vld [vmem:[%s7247_s7 + $0x38] sm:$0xff] }
 0x508   : > { %v2427_v16 = vsel %vm569_vm2, %v2421_v14, %v2423_v15  ;;  %v2443_v17 = vmax.f32 %v2399_v60, %v2423_v15  ;;  %v2564_v60 = vld [vmem:[%s7247_s7] sm:$0xff]  ;;  %vm5824_vm2 = vmmov 0  }
 0x509   : > { %v2442_v18 = vmax.f32 %v2398_v59, %v2427_v16  ;;  %v4764_v59 = vld [vmem:[%s7247_s7 + $0x78] sm:$0xff]  ;;  %v4781_v14 = vld [vmem:[%s7247_s7 + $0x80] sm:$0xff] }
 0x50a   : > { %4756 = vmatprep.mubr.msk.f32.mxu1 %vm2462_vm13, %v2443_v17 }
 0x50b   : > { %2559 = vmatmul.mubr.f32.gmra.mrb[12].mxu1 %v2442_v18  ;;  %v4782_v18 = vld [vmem:[%s7247_s7 + $0x88] sm:$0xff] }
 0x5d2   : > { %v2545_v19 = vpop.f32.mrb[6].mxu1 }
 0x5d3   : > { %v2547_v20 = vpop.f32.mrb[7].mxu1 }
 0x5d6   : > { %v2550_v21 = vpop.f32.mrb[8].mxu1 }
 0x5d7   : > { %v2552_v22 = vpop.f32.mrb[9].mxu1  ;;  %v5707_v23 = vpack.i.bf16 %v2550_v21, %v2545_v19  ;;  %v5364_v24 = vpack.c.bf16 %v2550_v21, %v2545_v19  ;;  %v4783_v19 = vld [vmem:[%s7247_s7 + $0x90] sm:$0xff] }
 0x5d9   : > { %5708 = vrot.lane.b32.xlu1 %v5707_v23, %s7281_s28 }
 0x5da   : > { %v2555_v25 = vpop.f32.mrb[10].mxu1 }
 0x5db   : > { %v2557_v27 = vpop.f32.mrb[11].mxu1 }
 0x5dc   : > { %v4787_v27 = vld [vmem:[%s7247_s7 + $0xb0] sm:$0xff] }
 0x5dd   : > { %5718 = vrot.lane.b32.xlu1 %v5707_v23, %s7282_s20 }
 0x5de   : > { %v2560_v28 = vpop.f32.mrb[12].mxu1 }
 0x5df   : > { %v2562_v29 = vpop.f32.mrb[13].mxu1  ;;  %v5712_v30 = vpack.i.bf16 %v2560_v28, %v2555_v25  ;;  %v5368_v31 = vpack.c.bf16 %v2560_v28, %v2555_v25 }
 0x5e0   : > { %v4788_v29 = vld [vmem:[%s7247_s7 + $0xb8] sm:$0xff] }
 0x5e1   : > { %5728 = vrot.lane.b32.xlu1 %v5707_v23, %s7283_s30  ;;  %5713 = vrot.lane.b32.xlu0 %v5712_v30, %s7281_s28 }
 0x5e5   : > { %5738 = vrot.lane.b32.xlu1 %v5707_v23, %s7284_s18  ;;  %5723 = vrot.lane.b32.xlu0 %v5712_v30, %s7282_s20  ;;  %v4784_v23 = vld [vmem:[%s7247_s7 + $0x98] sm:$0xff]  ;;  %s4609_s20 = sshll.u32 %s513_s2, 4  ;;  %s7199_s20 = int_to_ptr.vmem [resolvable:$true] %s4609_s20 }
 0x5e6   : > { %s5752_s23 = scalar_lea.vmem %s7199_s20, 16 }
 0x5e7   : > { %p5753_p11 = scmp.ne.s32.totalorder %s7199_s20, %s5752_s23 }
 0x5e9   : > { %3340 = vperm.xlu1 %5656, %v3330_v32   ;;  %5733 = vrot.lane.b32.xlu0 %v5712_v30, %s7283_s30  ;;  %s4597_s30 = scalar_lea.sflag [#allocation3], %s512_s1  ;;  %p5754_p12 = pnand %p5753_p11, %p5949_p5 }
 0x5eb   : > { %p5755_p13 = pneg %p5754_p12 }
 0x5ed   : > { %3350 = vperm.xlu1 %5656, %v3332_v33   ;;  %5743 = vrot.lane.b32.xlu0 %v5712_v30, %s7284_s18  ;;  %v4797_v30 = vld [vmem:[%s7247_s7 + $0xc0] sm:$0xff]  ;;  %v4798_v33 = vld [vmem:[%s7247_s7 + $0xc8] sm:$0xff]  ;;  %s5756_s18 = sshll.u32 %s5825_s25, 4  ;;  %s5757_s18 = int_to_ptr.vmem [resolvable:$false] %s5756_s18 }
 0x5ee   : > { %s5758_s3 = scalar_lea.vmem %s5757_s18, 32  ;;  %p5759_p0 = scmp.lt.s32.totalorder %s7199_s20, %s5757_s18 }
 0x5ef   : > { %p5760_p1 = scmp.lt.s32.totalorder %s5758_s3, %s5752_s23 }
 0x5f1   : > { %3360 = vperm.xlu1 %5656, %v3334_v34   ;;  %3345 = vperm.xlu0 %5655, %v3331_v35   ;;  %v4799_v34 = vld [vmem:[%s7247_s7 + $0xd0] sm:$0xff]  ;;  %p5761_p2 = por %p5760_p1, %p5759_p0 }
 0x5f3   : > { %p5762_p3 = pnand %p5761_p2, %p5755_p13 }
 0x5f5   : > { %3370 = vperm.xlu1 %5656, %v3336_v36   ;;  %3355 = vperm.xlu0 %5655, %v3333_v37   ;;  %v4800_v36 = vld [vmem:[%s7247_s7 + $0xd8] sm:$0xff]  ;;  %v4801_v37 = vld [vmem:[%s7247_s7 + $0xe0] sm:$0xff] }
 0x5f9   : > { %3365 = vperm.xlu0 %5655, %v3335_v38   ;;  %v4802_v38 = vld [vmem:[%s7247_s7 + $0xe8] sm:$0xff] }
 0x5fd   : > { %3375 = vperm.xlu0 %5655, %v3337_v39   ;;  %v4803_v39 = vld [vmem:[%s7247_s7 + $0xf0] sm:$0xff] }
 0x64b   : > { %v5709_v40 = vpop.permute.xlu1 %5708 }
 0x64c   : > { %v5711_v41 = vunpack.i.h.bf16 %v5709_v40  ;;  %v5710_v42 = vunpack.i.l.bf16 %v5709_v40  ;;  %v4804_v40 = vld [vmem:[%s7247_s7 + $0xf8] sm:$0xff] }
 0x64e   : > { %v5356_v43 = vpack.c.bf16 %v5711_v41, %v5710_v42  ;;  %v4813_v41 = vld [vmem:[%s7247_s7 + $0x100] sm:$0xff]  ;;  %v4814_v42 = vld [vmem:[%s7247_s7 + $0x108] sm:$0xff] }
 0x64f   : > { %v5719_v48 = vpop.permute.xlu1 %5718 }
 0x650   : > { %5357 = vmatprep.subr.bf16.mxu0 %v5356_v43  ;;  %v5721_v51 = vunpack.i.h.bf16 %v5719_v48  ;;  %v5720_v52 = vunpack.i.l.bf16 %v5719_v48  ;;  %v4820_v48 = vld [vmem:[%s7247_s7 + $0x138] sm:$0xff] }
 0x651   : > { %5359 = vmatpush3.bf16.msra.mxu0 %v5356_v43  ;;  %v4815_v43 = vld [vmem:[%s7247_s7 + $0x110] sm:$0xff] }
 0x652   : > { %v5372_v55 = vpack.c.bf16 %v5721_v51, %v5720_v52  ;;  %v3436_v51 = vld [vmem:[%s7249_s9 + $0x10] sm:$0xff] }
 0x653   : > { %v5714_v44 = vpop.permute.xlu0 %5713  ;;  %v5729_v63 = vpop.permute.xlu1 %5728 }
 0x654   : > { %v5716_v45 = vunpack.i.h.bf16 %v5714_v44  ;;  %v5715_v46 = vunpack.i.l.bf16 %v5714_v44  ;;  %v5731_v3 = vunpack.i.h.bf16 %v5729_v63  ;;  %v5730_v4 = vunpack.i.l.bf16 %v5729_v63  ;;  %v4816_v44 = vld [vmem:[%s7247_s7 + $0x118] sm:$0xff] }
 0x656   : > { %v5360_v47 = vpack.c.bf16 %v5716_v45, %v5715_v46  ;;  %v5380_v9 = vpack.c.bf16 %v5731_v3, %v5730_v4  ;;  %v4817_v45 = vld [vmem:[%s7247_s7 + $0x120] sm:$0xff]  ;;  %v4818_v46 = vld [vmem:[%s7247_s7 + $0x128] sm:$0xff] }
 0x657   : > { %v5724_v58 = vpop.permute.xlu0 %5723  ;;  %v5739_v17 = vpop.permute.xlu1 %5738 }
 0x658   : > { %5361 = vmatprep.subr.bf16.mxu0 %v5360_v47  ;;  %v5726_v61 = vunpack.i.h.bf16 %v5724_v58  ;;  %v5725_v62 = vunpack.i.l.bf16 %v5724_v58  ;;  %v5741_v20 = vunpack.i.h.bf16 %v5739_v17  ;;  %v5740_v21 = vunpack.i.l.bf16 %v5739_v17  ;;  %v3440_v58 = vld [vmem:[%s7249_s9 + $0x30] sm:$0xff] }
 0x659   : > { %5363 = vmatpush3.bf16.msra.mxu0 %v5360_v47  ;;  %v4819_v47 = vld [vmem:[%s7247_s7 + $0x130] sm:$0xff] }
 0x65a   : > { %5365 = vmatprep.subr.bf16.mxu0 %v5364_v24  ;;  %v5376_v5 = vpack.c.bf16 %v5726_v61, %v5725_v62  ;;  %v5388_v25 = vpack.c.bf16 %v5741_v20, %v5740_v21  ;;  %v3442_v61 = vld [vmem:[%s7249_s9 + $0x40] sm:$0x1]  ;;  %v4844_v20 = vld [vmem:[%s7250_s10 + $0x68] sm:$0xff] }
 0x65b   : > { %v5734_v12 = vpop.permute.xlu0 %5733 }
 0x65c   : > { %5102 = vmatmul.mubr.msk.f32.vlgmr.msra.gmra.mrb[12].mxu0 %vm2597_vm14, %v4758_v49  ;;  %v5736_v15 = vunpack.i.h.bf16 %v5734_v12  ;;  %v5735_v16 = vunpack.i.l.bf16 %v5734_v12  ;;  %v3434_v49 = vld [vmem:[%s7249_s9] sm:$0xff] }
 0x65d   : > { %5367 = vmatpush3.bf16.msra.mxu0 %v5364_v24  ;;  %5104 = vmatprep.mubr.msk.f32.mxu0 %vm2597_vm14, %v4759_v50  ;;  %v4785_v24 = vld [vmem:[%s7247_s7 + $0xa0] sm:$0xff]  ;;  %v3435_v50 = vld [vmem:[%s7249_s9 + $0x8] sm:$0xff] }
 0x65e   : > { %5369 = vmatprep.subr.bf16.mxu0 %v5368_v31  ;;  %v5384_v22 = vpack.c.bf16 %v5736_v15, %v5735_v16  ;;  %v5396_v52 = vpack.c.bf16 %v3435_v50, %v3434_v49  ;;  %v4843_v49 = vld [vmem:[%s7250_s10 + $0x60] sm:$0xff] }
 0x65f   : > { %v5744_v28 = vpop.permute.xlu0 %5743 }
 0x660   : > { %5105 = vmatmul.mubr.msk.f32.gmra.mrb[14].mxu0 %vm2597_vm14, %v4760_v53  ;;  %v5745_v32 = vunpack.i.l.bf16 %v5744_v28  ;;  %v3437_v53 = vld [vmem:[%s7249_s9 + $0x18] sm:$0xff]  ;;  %5397 = vmatprep.subr.bf16.mxu1 %v5396_v52 }
 0x661   : > { %5371 = vmatpush3.bf16.msra.mxu0 %v5368_v31  ;;  %5107 = vmatprep.mubr.msk.f32.mxu0 %vm2597_vm14, %v4761_v54  ;;  %v5746_v31 = vunpack.i.h.bf16 %v5744_v28  ;;  %v5400_v54 = vpack.c.bf16 %v3437_v53, %v3436_v51  ;;  %v3577_v28 = vld [vmem:[%s7250_s10] sm:$0xff]  ;;  %v4846_v51 = vld [vmem:[%s7250_s10 + $0x78] sm:$0xff] }
 0x662   : > { %5373 = vmatprep.subr.bf16.mxu0 %v5372_v55  ;;  %5399 = vmatpush3.bf16.msra.mxu1 %v5396_v52  ;;  %v4848_v52 = vld [vmem:[%s7250_s10 + $0x88] sm:$0xff] }
 0x663   : > { %v5392_v35 = vpack.c.bf16 %v5746_v31, %v5745_v32  ;;  %5401 = vmatprep.subr.bf16.mxu1 %v5400_v54  ;;  %v3582_v32 = vld [vmem:[%s7250_s10 + $0x28] sm:$0xff] }
 0x664   : > { %5108 = vmatmul.mubr.msk.f32.gmra.mrb[16].mxu0 %vm2597_vm14, %v4762_v56  ;;  %v3439_v56 = vld [vmem:[%s7249_s9 + $0x28] sm:$0xff] }
 0x665   : > { %5110 = vmatprep.mubr.msk.f32.mxu0 %vm2597_vm14, %v4763_v57 }
 0x666   : > { %5403 = vmatpush3.bf16.msra.mxu1 %v5400_v54 }
 0x668   : > { %5111 = vmatmul.mubr.msk.f32.gmra.mrb[18].mxu0 %vm2597_vm14, %v4764_v59  ;;  %v3441_v59 = vld [vmem:[%s7249_s9 + $0x38] sm:$0xff]  ;;  %v3341_v63 = vpop.permute.xlu1 %3340 }
 0x669   : > { %5121 = vmatprep.mubr.msk.f32.mxu0 %vm2597_vm14, %v2564_v60  ;;  %v5408_v60 = vpack.c.bf16 %v3441_v59, %v3440_v58  ;;  %v4845_v58 = vld [vmem:[%s7250_s10 + $0x70] sm:$0xff]  ;;  %v4847_v59 = vld [vmem:[%s7250_s10 + $0x80] sm:$0xff] }
 0x66c   : > { %5122 = vmatmul.mubr.msk.f32.vlgmr.msra.gmra.mrb[12].mxu0 %vm2597_vm14, %v2565_v0  ;;  %v3351_v3 = vpop.permute.xlu1 %3350 }
 0x66d   : > { %5375 = vmatpush3.bf16.msra.mxu0 %v5372_v55  ;;  %5124 = vmatprep.mubr.msk.f32.mxu0 %vm2597_vm14, %v2566_v2  ;;  %v3438_v55 = vld [vmem:[%s7249_s9 + $0x20] sm:$0xff] }
 0x66e   : > { %5377 = vmatprep.subr.bf16.mxu0 %v5376_v5  ;;  %v5404_v57 = vpack.c.bf16 %v3439_v56, %v3438_v55 }
 0x670   : > { %5125 = vmatmul.mubr.msk.f32.gmra.mrb[14].mxu0 %vm2597_vm14, %v2567_v6  ;;  %5405 = vmatprep.subr.bf16.mxu1 %v5404_v57  ;;  %v3346_v62 = vpop.permute.xlu0 %3345  ;;  %v3361_v15 = vpop.permute.xlu1 %3360 }
 0x671   : > { %5379 = vmatpush3.bf16.msra.mxu0 %v5376_v5  ;;  %5127 = vmatprep.mubr.msk.f32.mxu0 %vm2597_vm14, %v2568_v7 }
 0x672   : > { %5381 = vmatprep.subr.bf16.mxu0 %v5380_v9  ;;  %5407 = vmatpush3.bf16.msra.mxu1 %v5404_v57  ;;  %v5424_v57 = vpack.c.bf16 %v4848_v52, %v4846_v51  ;;  %v4919_v51 = vld [vmem:[%s7250_s10 + $0x230] sm:$0xff] }
 0x673   : > { %5409 = vmatprep.subr.bf16.mxu1 %v5408_v60 }
 0x674   : > { %5128 = vmatmul.mubr.msk.f32.gmra.mrb[16].mxu0 %vm2597_vm14, %v2569_v10  ;;  %v3356_v0 = vpop.permute.xlu0 %3355 }
 0x675   : > { %5130 = vmatprep.mubr.msk.f32.mxu0 %vm2597_vm14, %v2570_v11 }
 0x676   : > { %5411 = vmatpush3.bf16.msra.mxu1 %v5408_v60 }
 0x677   : > { %5209 = vmatprep.subr.msk.mxu1 %vm3468_vm15, %v3442_v61 }
 0x678   : > { %5131 = vmatmul.mubr.msk.f32.gmra.mrb[18].mxu0 %vm2597_vm14, %v2571_v13  ;;  %v3366_v13 = vpop.permute.xlu0 %3365 }
 0x679   : > { %5141 = vmatprep.mubr.msk.f32.mxu0 %vm2597_vm14, %v4781_v14 }
 0x67a   : > { %5210 = vmatpush3.msk.msra.mxu1 %vm3468_vm15, %v3442_v61 }
 0x67c   : > { %5142 = vmatmul.mubr.msk.f32.vlgmr.msra.gmra.mrb[12].mxu0 %vm2597_vm14, %v4782_v18 }
 0x67d   : > { %5383 = vmatpush3.bf16.msra.mxu0 %v5380_v9  ;;  %5144 = vmatprep.mubr.msk.f32.mxu0 %vm2597_vm14, %v4783_v19  ;;  %v4842_v19 = vld [vmem:[%s7250_s10 + $0x58] sm:$0xff] }
 0x67e   : > { %5385 = vmatprep.subr.bf16.mxu0 %v5384_v22 }
 0x680   : > { %5145 = vmatmul.mubr.msk.f32.gmra.mrb[14].mxu0 %vm2597_vm14, %v4784_v23  ;;  %v5420_v23 = vpack.c.bf16 %v4844_v20, %v4842_v19  ;;  %v4854_v20 = vld [vmem:[%s7250_s10 + $0xa0] sm:$0xff] }
 0x681   : > { %5387 = vmatpush3.bf16.msra.mxu0 %v5384_v22  ;;  %5147 = vmatprep.mubr.msk.f32.mxu0 %vm2597_vm14, %v4785_v24  ;;  %v3578_v24 = vld [vmem:[%s7250_s10 + $0x8] sm:$0xff] }
 0x682   : > { %5389 = vmatprep.subr.bf16.mxu0 %v5388_v25  ;;  %5421 = vmatprep.subr.bf16.mxu1 %v5420_v23  ;;  %v4895_v23 = vld [vmem:[%s7250_s10 + $0x1a0] sm:$0xff] }
 0x684   : > { %5148 = vmatmul.mubr.msk.f32.gmra.mrb[16].mxu0 %vm2597_vm14, %v4786_v26 }
 0x685   : > { %5150 = vmatprep.mubr.msk.f32.mxu0 %vm2597_vm14, %v4787_v27 }
 0x688   : > { %5151 = vmatmul.mubr.msk.f32.gmra.mrb[18].mxu0 %vm2597_vm14, %v4788_v29  ;;  %v3579_v29 = vld [vmem:[%s7250_s10 + $0x10] sm:$0xff] }
 0x689   : > { %5161 = vmatprep.mubr.msk.f32.mxu0 %vm2597_vm14, %v4797_v30  ;;  %v5414_v31 = vpack.c.bf16 %v3579_v29, %v3577_v28 }
 0x68c   : > { %5162 = vmatmul.mubr.msk.f32.vlgmr.msra.gmra.mrb[12].mxu0 %vm2597_vm14, %v4798_v33  ;;  %v3584_v33 = vld [vmem:[%s7250_s10 + $0x38] sm:$0xff] }
 0x68d   : > { %5391 = vmatpush3.bf16.msra.mxu0 %v5388_v25  ;;  %5164 = vmatprep.mubr.msk.f32.mxu0 %vm2597_vm14, %v4799_v34  ;;  %v3580_v25 = vld [vmem:[%s7250_s10 + $0x18] sm:$0xff]  ;;  %v3376_v34 = vpop.permute.xlu0 %3375 }
 0x68e   : > { %5393 = vmatprep.subr.bf16.mxu0 %v5392_v35  ;;  %v5412_v27 = vpack.c.bf16 %v3580_v25, %v3578_v24  ;;  %v4859_v24 = vld [vmem:[%s7250_s10 + $0xc8] sm:$0xff]  ;;  %v4861_v25 = vld [vmem:[%s7250_s10 + $0xd8] sm:$0xff] }
 0x690   : > { %5165 = vmatmul.mubr.msk.f32.gmra.mrb[14].mxu0 %vm2597_vm14, %v4800_v36 }
 0x691   : > { %5395 = vmatpush3.bf16.msra.mxu0 %v5392_v35  ;;  %5167 = vmatprep.mubr.msk.f32.mxu0 %vm2597_vm14, %v4801_v37  ;;  %v5416_v37 = vpack.c.bf16 %v3584_v33, %v3582_v32  ;;  %v4860_v32 = vld [vmem:[%s7250_s10 + $0xd0] sm:$0xff] }
 0x692   : > { %5413 = vmatprep.subr.bf16.mxu0 %v5412_v27  ;;  %v4900_v27 = vld [vmem:[%s7250_s10 + $0x1c8] sm:$0xff] }
 0x694   : > { %5168 = vmatmul.mubr.msk.f32.gmra.mrb[16].mxu0 %vm2597_vm14, %v4802_v38  ;;  %v3581_v38 = vld [vmem:[%s7250_s10 + $0x20] sm:$0xff] }
 0x695   : > { %5170 = vmatprep.mubr.msk.f32.mxu0 %vm2597_vm14, %v4803_v39  ;;  %v3371_v39 = vpop.permute.xlu1 %3370 }
 0x698   : > { %5171 = vmatmul.mubr.msk.f32.gmra.mrb[18].mxu0 %vm2597_vm14, %v4804_v40 }
 0x699   : > { %5181 = vmatprep.mubr.msk.f32.mxu0 %vm2597_vm14, %v4813_v41 }
 0x69c   : > { %5182 = vmatmul.mubr.msk.f32.vlgmr.msra.gmra.mrb[12].mxu0 %vm2597_vm14, %v4814_v42  ;;  %v3583_v42 = vld [vmem:[%s7250_s10 + $0x30] sm:$0xff] }
 0x69d   : > { %5184 = vmatprep.mubr.msk.f32.mxu0 %vm2597_vm14, %v4815_v43  ;;  %5415 = vmatpush1.bf16.msra.mxu0 %v5414_v31  ;;  %v4858_v31 = vld [vmem:[%s7250_s10 + $0xc0] sm:$0xff] }
 0x69e   : > { %5417 = vmatprep.subr.bf16.mxu0 %v5416_v37 }
 0x6a0   : > { %5185 = vmatmul.mubr.msk.f32.gmra.mrb[14].mxu0 %vm2597_vm14, %v4816_v44  ;;  %v5418_v44 = vpack.c.bf16 %v3583_v42, %v3581_v38  ;;  %v5434_v38 = vpack.c.bf16 %v4860_v32, %v4858_v31  ;;  %v4868_v42 = vld [vmem:[%s7250_s10 + $0xf8] sm:$0xff]  ;;  %v4906_v31 = vld [vmem:[%s7250_s10 + $0x1e0] sm:$0xff]  ;;  %v4908_v32 = vld [vmem:[%s7250_s10 + $0x1f0] sm:$0xff] }
 0x6a1   : > { %5187 = vmatprep.mubr.msk.f32.mxu0 %vm2597_vm14, %v4817_v45 }
 0x6a2   : > { %5419 = vmatpush1.bf16.msra.mxu0 %v5418_v44 }
 0x6a4   : > { %5188 = vmatmul.mubr.msk.f32.gmra.mrb[16].mxu0 %vm2597_vm14, %v4818_v46  ;;  %v3586_v46 = vld [vmem:[%s7250_s10 + $0x48] sm:$0x1] }
 0x6a5   : > { %5190 = vmatprep.mubr.msk.f32.mxu0 %vm2597_vm14, %v4819_v47  ;;  %4838 = vmatprep.subr.msk.mxu0 %vm3468_vm15, %v3586_v46  ;;  %v4902_v46 = vld [vmem:[%s7250_s10 + $0x1d8] sm:$0x1] }
 0x6a8   : > { %5191 = vmatmul.mubr.msk.f32.gmra.mrb[18].mxu0 %vm2597_vm14, %v4820_v48  ;;  %v4841_v48 = vld [vmem:[%s7250_s10 + $0x50] sm:$0xff] }
 0x6a9   : > { %3661 = vmatprep.mubr.f32.mxu0 %v5816_v1  ;;  %v5422_v55 = vpack.c.bf16 %v4843_v49, %v4841_v48  ;;  %v4869_v48 = vld [vmem:[%s7250_s10 + $0x100] sm:$0xff]  ;;  %v4920_v49 = vld [vmem:[%s7250_s10 + $0x238] sm:$0xff] }
 0x76f   : > { %v5183_v2 = vpop.f32.mrb[12].mxu0 }
 0x770   : > { %v6727_v4 = vadd.f32 %v5183_v2, %v3346_v62  ;;  %v3283_v5 = vpop.f32.mrb[13].mxu0 }
 0x771   : > { %v6729_v6 = vadd.f32 %v3341_v63, %v3283_v5  ;;  %v5426_v63 = vpack.c.bf16 %v4847_v59, %v4845_v58  ;;  %v4924_v58 = vld [vmem:[%s7250_s10 + $0x258] sm:$0xff]  ;;  %v4926_v59 = vld [vmem:[%s7250_s10 + $0x268] sm:$0xff] }
 0x772   : > { %v3387_v7 = vmax.f32 %v6727_v4, 0.0 }
 0x773   : > { %v3386_v9 = vmax.f32 %v6729_v6, 0.0  ;;  %v5186_v10 = vpop.f32.mrb[14].mxu0 }
 0x774   : > { %v6733_v11 = vadd.f32 %v5186_v10, %v3356_v0  ;;  %3404 = vrot.lane.b32.xlu0 %v3387_v7, %s7281_s28  ;;  %v3293_v12 = vpop.f32.mrb[15].mxu0 }
 0x775   : > { %v6738_v14 = vadd.f32 %v3351_v3, %v3293_v12  ;;  %3402 = vrot.lane.b32.xlu1 %v3386_v9, %s7281_s28  ;;  %v4850_v3 = vld [vmem:[%s7250_s10 + $0x98] sm:$0x1] }
 0x776   : > { %v3389_v16 = vmax.f32 %v6733_v11, 0.0 }
 0x777   : > { %v3388_v17 = vmax.f32 %v6738_v14, 0.0  ;;  %v5189_v18 = vpop.f32.mrb[16].mxu0  ;;  %v4857_v14 = vld [vmem:[%s7250_s10 + $0xb8] sm:$0xff] }
 0x778   : > { %v6749_v21 = vadd.f32 %v5189_v18, %v3366_v13  ;;  %3408 = vrot.lane.b32.xlu0 %v3389_v16, %s7281_s28  ;;  %v3303_v22 = vpop.f32.mrb[17].mxu0  ;;  %v4855_v13 = vld [vmem:[%s7250_s10 + $0xa8] sm:$0xff] }
 0x779   : > { %v3382_v26 = vadd.f32 %v3361_v15, %v3303_v22  ;;  %3406 = vrot.lane.b32.xlu1 %v3388_v17, %s7281_s28  ;;  %v5428_v15 = vpack.c.bf16 %v4857_v14, %v4855_v13  ;;  %v4896_v18 = vld [vmem:[%s7250_s10 + $0x1a8] sm:$0xff]  ;;  %v4893_v22 = vld [vmem:[%s7250_s10 + $0x190] sm:$0xff]  ;;  %v4883_v14 = vld [vmem:[%s7250_s10 + $0x158] sm:$0xff] }
 0x77a   : > { %v3391_v30 = vmax.f32 %v6749_v21, 0.0  ;;  %v4856_v21 = vld [vmem:[%s7250_s10 + $0xb0] sm:$0xff]  ;;  %v5454_v29 = vpack.c.bf16 %v4895_v23, %v4893_v22  ;;  %v4881_v13 = vld [vmem:[%s7250_s10 + $0x148] sm:$0xff] }
 0x77b   : > { %v3390_v35 = vmax.f32 %v3382_v26, 0.0  ;;  %v5192_v36 = vpop.f32.mrb[18].mxu0  ;;  %v4898_v26 = vld [vmem:[%s7250_s10 + $0x1b8] sm:$0xff]  ;;  %v5430_v28 = vpack.c.bf16 %v4856_v21, %v4854_v20  ;;  %v4875_v20 = vld [vmem:[%s7250_s10 + $0x130] sm:$0x1]  ;;  %v5444_v21 = vpack.c.bf16 %v4883_v14, %v4881_v13 }
 0x77c   : > { %v3385_v40 = vadd.f32 %v5192_v36, %v3376_v34  ;;  %3412 = vrot.lane.b32.xlu0 %v3391_v30, %s7281_s28  ;;  %v3313_v41 = vpop.f32.mrb[19].mxu0  ;;  %v5456_v34 = vpack.c.bf16 %v4900_v27, %v4898_v26  ;;  %v4899_v36 = vld [vmem:[%s7250_s10 + $0x1c0] sm:$0xff]  ;;  %v4927_v23 = vld [vmem:[%s7250_s10 + $0x270] sm:$0x1]  ;;  %v548_v13 = vld [vmem:[%s7252_s12 + $0xd8] sm:$0xff] }
 0x77d   : > { %v3384_v43 = vadd.f32 %v3371_v39, %v3313_v41  ;;  %3410 = vrot.lane.b32.xlu1 %v3390_v35, %s7281_s28  ;;  %v4863_v41 = vld [vmem:[%s7250_s10 + $0xe8] sm:$0x1]  ;;  %v4886_v26 = vld [vmem:[%s7250_s10 + $0x170] sm:$0xff] }
 0x77e   : > { %v3393_v45 = vmax.f32 %v3385_v40, 0.0 }
 0x77f   : > { %v3392_v47 = vmax.f32 %v3384_v43, 0.0  ;;  %v4870_v43 = vld [vmem:[%s7250_s10 + $0x108] sm:$0xff] }
 0x780   : > { %3416 = vrot.lane.b32.xlu0 %v3393_v45, %s7281_s28  ;;  %v5436_v52 = vpack.c.bf16 %v4870_v43, %v4868_v42  ;;  %v4915_v42 = vld [vmem:[%s7250_s10 + $0x228] sm:$0x1]  ;;  %v4914_v43 = vld [vmem:[%s7250_s10 + $0x220] sm:$0x1] }
 0x781   : > { %3414 = vrot.lane.b32.xlu1 %v3392_v47, %s7281_s28  ;;  %s7197_s28 = scalar_lea.hbm %s7256_s16, %s4933_s27 }
 0x7e6   : > { %v3405_v50 = vpop.permute.xlu0 %3404 }
 0x7e7   : > { %v3403_v53 = vpop.permute.xlu1 %3402  ;;  %v3427_v56 = vmax.f32 %v3387_v7, %v3405_v50  ;;  %v4849_v7 = vld [vmem:[%s7250_s10 + $0x90] sm:$0x1]  ;;  %v4922_v50 = vld [vmem:[%s7250_s10 + $0x248] sm:$0xff] }
 0x7e8   : > { %v3426_v54 = vmax.f32 %v3386_v9, %v3403_v53  ;;  %v4921_v53 = vld [vmem:[%s7250_s10 + $0x240] sm:$0xff] }
 0x7ea   : > { %5211 = vmatprep.mubr.msk.f32.mxu1 %vm3443_vm0, %v3426_v54  ;;  %v3409_v60 = vpop.permute.xlu0 %3408  ;;  %v4872_v54 = vld [vmem:[%s7250_s10 + $0x118] sm:$0xff] }
 0x7eb   : > { %5212 = vmatmul.mubr.msk.f32.vlgmr.msra.gmra.mrb[14].mxu1 %vm3443_vm0, %v3427_v56  ;;  %v3407_v61 = vpop.permute.xlu1 %3406  ;;  %v3429_v0 = vmax.f32 %v3389_v16, %v3409_v60  ;;  %v4894_v16 = vld [vmem:[%s7250_s10 + $0x198] sm:$0xff] }
 0x7ec   : > { %v3428_v62 = vmax.f32 %v3388_v17, %v3407_v61  ;;  %5423 = vmatpush1.bf16.msra.mxu1 %v5422_v55  ;;  %v3585_v17 = vld [vmem:[%s7250_s10 + $0x40] sm:$0x1]  ;;  %v5452_v19 = vpack.c.bf16 %v4896_v18, %v4894_v16  ;;  %v4874_v55 = vld [vmem:[%s7250_s10 + $0x128] sm:$0xff]  ;;  %v4901_v61 = vld [vmem:[%s7250_s10 + $0x1d0] sm:$0x1] }
 0x7ed   : > { %5425 = vmatprep.subr.bf16.mxu1 %v5424_v57  ;;  %4839 = vmatpush1.msk.msra.mxu0 %vm3468_vm15, %v3585_v17  ;;  %v4882_v16 = vld [vmem:[%s7250_s10 + $0x150] sm:$0xff]  ;;  %v4928_v17 = vld [vmem:[%s7250_s10 + $0x278] sm:$0x1]  ;;  %v4885_v18 = vld [vmem:[%s7250_s10 + $0x168] sm:$0xff] }
 0x7ee   : > { %5214 = vmatprep.mubr.msk.f32.mxu1 %vm3443_vm0, %v3428_v62  ;;  %v3413_v2 = vpop.permute.xlu0 %3412  ;;  %5453 = vmatprep.subr.bf16.mxu0 %v5452_v19  ;;  %v5468_v62 = vpack.c.bf16 %v4922_v50, %v4920_v49  ;;  %v4887_v19 = vld [vmem:[%s7250_s10 + $0x178] sm:$0xff]  ;;  %v539_v50 = vld [vmem:[%s7252_s12 + $0x90] sm:$0xff] }
 0x7ef   : > { %5215 = vmatmul.mubr.msk.f32.gmra.mrb[16].mxu1 %vm3443_vm0, %v3429_v0  ;;  %v3411_v4 = vpop.permute.xlu1 %3410  ;;  %v3431_v6 = vmax.f32 %v3391_v30, %v3413_v2  ;;  %v5432_v30 = vpack.c.bf16 %v4861_v25, %v4859_v24  ;;  %v4873_v0 = vld [vmem:[%s7250_s10 + $0x120] sm:$0xff]  ;;  %v5470_v2 = vpack.c.bf16 %v4921_v53, %v4919_v51  ;;  %v5448_v24 = vpack.c.bf16 %v4887_v19, %v4885_v18  ;;  %v540_v51 = vld [vmem:[%s7252_s12 + $0x98] sm:$0xff]  ;;  %v523_v53 = vld [vmem:[%s7252_s12 + $0x10] sm:$0xff] }
 0x7f0   : > { %v3430_v5 = vmax.f32 %v3390_v35, %v3411_v4  ;;  %5427 = vmatpush1.bf16.msra.mxu1 %v5426_v63  ;;  %v4897_v35 = vld [vmem:[%s7250_s10 + $0x1b0] sm:$0xff]  ;;  %v5472_v4 = vpack.c.bf16 %v4926_v59, %v4924_v58  ;;  %v4884_v25 = vld [vmem:[%s7250_s10 + $0x160] sm:$0xff]  ;;  %v550_v19 = vld [vmem:[%s7252_s12 + $0xe8] sm:$0xff] }
 0x7f1   : > { %4851 = vmatprep.subr.msk.mxu1 %vm3468_vm15, %v4850_v3  ;;  %v5458_v39 = vpack.c.bf16 %v4899_v36, %v4897_v35  ;;  %v4871_v63 = vld [vmem:[%s7250_s10 + $0x110] sm:$0xff]  ;;  %v5440_v3 = vpack.c.bf16 %v4874_v55, %v4872_v54  ;;  %v5450_v27 = vpack.c.bf16 %v4886_v26, %v4884_v25  ;;  %v4888_v35 = vld [vmem:[%s7250_s10 + $0x180] sm:$0x1]  ;;  %v524_v54 = vld [vmem:[%s7252_s12 + $0x18] sm:$0xff] }
 0x7f2   : > { %5217 = vmatprep.mubr.msk.f32.mxu1 %vm3443_vm0, %v3430_v5  ;;  %v3417_v9 = vpop.permute.xlu0 %3416  ;;  %v4923_v5 = vld [vmem:[%s7250_s10 + $0x250] sm:$0xff]  ;;  %v5482_v55 = vpack.c.bf16 %v524_v54, %v523_v53  ;;  %v525_v59 = vld [vmem:[%s7252_s12 + $0x20] sm:$0xff]  ;;  %v552_v25 = vld [vmem:[%s7252_s12 + $0xf8] sm:$0xff] }
 0x7f3   : > { %5218 = vmatmul.mubr.msk.f32.gmra.mrb[18].mxu1 %vm3443_vm0, %v3431_v6  ;;  %v3415_v10 = vpop.permute.xlu1 %3414  ;;  %v3433_v12 = vmax.f32 %v3393_v45, %v3417_v9  ;;  %v4862_v45 = vld [vmem:[%s7250_s10 + $0xe0] sm:$0x1]  ;;  %v5442_v9 = vpack.c.bf16 %v4873_v0, %v4871_v63  ;;  %v544_v63 = vld [vmem:[%s7252_s12 + $0xb8] sm:$0xff]  ;;  %v535_v26 = vld [vmem:[%s7252_s12 + $0x70] sm:$0xff] }
 0x7f4   : > { %v3432_v11 = vmax.f32 %v3392_v47, %v3415_v10  ;;  %4852 = vmatpush1.msk.msra.mxu1 %vm3468_vm15, %v4849_v7  ;;  %v4867_v47 = vld [vmem:[%s7250_s10 + $0xf0] sm:$0xff]  ;;  %v4925_v6 = vld [vmem:[%s7250_s10 + $0x260] sm:$0xff] }
 0x7f5   : > { %5429 = vmatprep.subr.bf16.mxu1 %v5428_v15  ;;  %v5438_v57 = vpack.c.bf16 %v4869_v48, %v4867_v47  ;;  %v4880_v15 = vld [vmem:[%s7250_s10 + $0x140] sm:$0xff]  ;;  %v522_v48 = vld [vmem:[%s7252_s12 + $0x8] sm:$0xff] }
 0x7f6   : > { %5220 = vmatprep.mubr.msk.f32.mxu1 %vm3443_vm0, %v3432_v11  ;;  %v5474_v11 = vpack.c.bf16 %v4925_v6, %v4923_v5  ;;  %v5446_v22 = vpack.c.bf16 %v4882_v16, %v4880_v15  ;;  %v521_v47 = vld [vmem:[%s7252_s12] sm:$0xff]  ;;  %v546_v6 = vld [vmem:[%s7252_s12 + $0xc8] sm:$0xff]  ;;  %v531_v15 = vld [vmem:[%s7252_s12 + $0x50] sm:$0xff] }
 0x7f7   : > { %5221 = vmatmul.mubr.msk.f32.gmra.mrb[20].mxu1 %vm3443_vm0, %v3433_v12  ;;  %v4876_v12 = vld [vmem:[%s7250_s10 + $0x138] sm:$0x1]  ;;  %v5478_v49 = vpack.c.bf16 %v522_v48, %v521_v47  ;;  %v545_v5 = vld [vmem:[%s7252_s12 + $0xc0] sm:$0xff] }
 0x7f8   : > { %3768 = vmatprep.mubr.f32.mxu1 %v5816_v1  ;;  %v532_v16 = vld [vmem:[%s7252_s12 + $0x58] sm:$0xff]  ;;  %v549_v18 = vld [vmem:[%s7252_s12 + $0xe0] sm:$0xff] }
 0x8be   : > { %v5213_v33 = vpop.f32.mrb[14].mxu1 }
 0x8bf   : > { %v3538_v37 = vpop.f32.mrb[15].mxu1  ;;  %4853 = vmatmul.mubr.msk.f32.vlgmr.msra.gmra.mrb[22].mxu1 %vm3587_vm1, %v5213_v33  ;;  %v4911_v33 = vld [vmem:[%s7250_s10 + $0x208] sm:$0xff] }
 0x8c0   : > { %5431 = vmatpush1.bf16.msra.mxu1 %v5430_v28  ;;  %4840 = vmatmul.mubr.msk.f32.vlgmr.msra.gmra.mrb[20].mxu0 %vm3587_vm1, %v3538_v37  ;;  %v4889_v28 = vld [vmem:[%s7250_s10 + $0x188] sm:$0x1]  ;;  %v5462_v37 = vpack.c.bf16 %v4908_v32, %v4906_v31 }
 0x8c1   : > { %5455 = vmatpush1.bf16.msra.mxu0 %v5454_v29  ;;  %5433 = vmatprep.subr.bf16.mxu1 %v5432_v30  ;;  %v4907_v29 = vld [vmem:[%s7250_s10 + $0x1e8] sm:$0xff]  ;;  %v4909_v30 = vld [vmem:[%s7250_s10 + $0x1f8] sm:$0xff] }
 0x8c2   : > { %v6881_v40 = vpop.f32.mrb[16].mxu1  ;;  %5457 = vmatprep.subr.bf16.mxu0 %v5456_v34  ;;  %3875 = vmatprep.mubr.f32.mxu1 %v5816_v1  ;;  %v4913_v34 = vld [vmem:[%s7250_s10 + $0x218] sm:$0xff]  ;;  %v5460_v36 = vpack.c.bf16 %v4909_v30, %v4907_v29  ;;  %v7146_v30 = vld [vmem:[%s7251_s11] sm:$0xff]  ;;  %v7151_v31 = vld [vmem:[%s7251_s11 + $0x8] sm:$0xff] }
 0x8c3   : > { %v3548_v44 = vpop.f32.mrb[17].mxu1  ;;  %4196 = vmatprep.mubr.f32.mxu0 %v5816_v1 }
 0x8c4   : > { %5435 = vmatpush1.bf16.msra.mxu1 %v5434_v38  ;;  %v5464_v38 = vpack.c.bf16 %v4913_v34, %v4911_v33 }
 0x8c5   : > { %5459 = vmatpush1.bf16.msra.mxu0 %v5458_v39  ;;  %4864 = vmatprep.subr.msk.mxu1 %vm3468_vm15, %v4863_v41  ;;  %v4910_v39 = vld [vmem:[%s7250_s10 + $0x200] sm:$0xff] }
 0x8c6   : > { %v5219_v56 = vpop.f32.mrb[18].mxu1  ;;  %4903 = vmatprep.subr.msk.mxu0 %vm3468_vm15, %v4902_v46 }
 0x8c7   : > { %v6932_v60 = vpop.f32.mrb[19].mxu1 }
 0x8c8   : > { %4865 = vmatpush1.msk.msra.mxu1 %vm3468_vm15, %v4862_v45  ;;  %v538_v45 = vld [vmem:[%s7252_s12 + $0x88] sm:$0xff] }
 0x8c9   : > { %4866 = vmatmul.mubr.msk.f32.vlgmr.msra.gmra.mrb[24].mxu1 %vm3587_vm1, %v3548_v44  ;;  %5437 = vmatprep.subr.bf16.mxu1 %v5436_v52  ;;  %v537_v44 = vld [vmem:[%s7252_s12 + $0x80] sm:$0xff]  ;;  %v5480_v52 = vpack.c.bf16 %v540_v51, %v539_v50 }
 0x8ca   : > { %4904 = vmatpush1.msk.msra.mxu0 %vm3468_vm15, %v4901_v61  ;;  %5439 = vmatpush1.bf16.msra.mxu1 %v5438_v57  ;;  %v5222_v7 = vpop.f32.mrb[20].mxu1  ;;  %v5476_v46 = vpack.c.bf16 %v538_v45, %v537_v44  ;;  %v542_v57 = vld [vmem:[%s7252_s12 + $0xa8] sm:$0xff] }
 0x8cb   : > { %4905 = vmatmul.mubr.msk.f32.vlgmr.msra.gmra.mrb[22].mxu0 %vm3587_vm1, %v5219_v56  ;;  %5469 = vmatprep.subr.bf16.mxu0 %v5468_v62  ;;  %v6953_v10 = vpop.f32.mrb[21].mxu1  ;;  %v541_v56 = vld [vmem:[%s7252_s12 + $0xa0] sm:$0xff]  ;;  %v543_v62 = vld [vmem:[%s7252_s12 + $0xb0] sm:$0xff] }
 0x8cc   : > { %5471 = vmatpush1.bf16.msra.mxu0 %v5470_v2  ;;  %5441 = vmatprep.subr.bf16.mxu1 %v5440_v3  ;;  %v5484_v58 = vpack.c.bf16 %v542_v57, %v541_v56  ;;  %v5488_v0 = vpack.c.bf16 %v544_v63, %v543_v62  ;;  %v527_v2 = vld [vmem:[%s7252_s12 + $0x30] sm:$0xff]  ;;  %v528_v3 = vld [vmem:[%s7252_s12 + $0x38] sm:$0xff] }
 0x8cd   : > { %5473 = vmatprep.subr.bf16.mxu0 %v5472_v4  ;;  %3982 = vmatprep.mubr.f32.mxu1 %v5816_v1  ;;  %v5490_v4 = vpack.c.bf16 %v528_v3, %v527_v2 }
 0x8ce   : > { %5443 = vmatpush1.bf16.msra.mxu1 %v5442_v9  ;;  %4410 = vmatprep.mubr.f32.mxu0 %v5816_v1  ;;  %v529_v9 = vld [vmem:[%s7252_s12 + $0x40] sm:$0xff] }
 0x8cf   : > { %4877 = vmatprep.subr.msk.mxu1 %vm3468_vm15, %v4876_v12  ;;  %v547_v12 = vld [vmem:[%s7252_s12 + $0xd0] sm:$0xff] }
 0x8d0   : > { %5475 = vmatpush1.bf16.msra.mxu0 %v5474_v11  ;;  %v5496_v14 = vpack.c.bf16 %v548_v13, %v547_v12 }
 0x8d1   : > { %4929 = vmatprep.subr.msk.mxu0 %vm3468_vm15, %v4928_v17  ;;  %v5498_v17 = vpack.c.bf16 %v532_v16, %v531_v15 }
 0x8d2   : > { %4878 = vmatpush1.msk.msra.mxu1 %vm3468_vm15, %v4875_v20  ;;  %v5500_v20 = vpack.c.bf16 %v550_v19, %v549_v18 }
 0x8d3   : > { %4879 = vmatmul.mubr.msk.f32.vlgmr.msra.gmra.mrb[26].mxu1 %vm3587_vm1, %v6881_v40  ;;  %5445 = vmatprep.subr.bf16.mxu1 %v5444_v21  ;;  %v4912_v40 = vld [vmem:[%s7250_s10 + $0x210] sm:$0xff]  ;;  %v533_v21 = vld [vmem:[%s7252_s12 + $0x60] sm:$0xff] }
 0x8d4   : > { %4930 = vmatpush1.msk.msra.mxu0 %vm3468_vm15, %v4927_v23  ;;  %5447 = vmatpush1.bf16.msra.mxu1 %v5446_v22  ;;  %v5466_v41 = vpack.c.bf16 %v4912_v40, %v4910_v39  ;;  %v534_v22 = vld [vmem:[%s7252_s12 + $0x68] sm:$0xff] }
 0x8d5   : > { %4931 = vmatmul.mubr.msk.f32.vlgmr.msra.gmra.mrb[24].mxu0 %vm3587_vm1, %v5222_v7  ;;  %5449 = vmatprep.subr.bf16.mxu1 %v5448_v24  ;;  %v5492_v7 = vpack.c.bf16 %v546_v6, %v545_v5  ;;  %v5502_v23 = vpack.c.bf16 %v534_v22, %v533_v21  ;;  %v551_v24 = vld [vmem:[%s7252_s12 + $0xf0] sm:$0xff] }
 0x8d6   : > { %4089 = vmatprep.mubr.f32.mxu1 %v5816_v1  ;;  %5508 = vmatprep.subr.bf16.mxu0 %v5823_v8 }
 0x8d7   : > { %5231 = vmatprep.mubr.msk.f32.mxu0 %vm5824_vm2, %v5816_v1 }
 0x8d8   : > { %5451 = vmatpush1.bf16.msra.mxu1 %v5450_v27  ;;  %v5504_v27 = vpack.c.bf16 %v552_v25, %v551_v24 }
 0x8d9   : > { %4890 = vmatprep.subr.msk.mxu1 %vm3468_vm15, %v4889_v28  ;;  %v536_v28 = vld [vmem:[%s7252_s12 + $0x78] sm:$0xff] }
 0x8da   : > { %v5506_v29 = vpack.c.bf16 %v536_v28, %v535_v26 }
 0x8dc   : > { %4891 = vmatpush1.msk.msra.mxu1 %vm3468_vm15, %v4888_v35 }
 0x8dd   : > { %4892 = vmatmul.mubr.msk.f32.vlgmr.msra.gmra.mrb[28].mxu1 %vm3587_vm1, %v6932_v60  ;;  %5461 = vmatprep.subr.bf16.mxu1 %v5460_v36  ;;  %v526_v60 = vld [vmem:[%s7252_s12 + $0x28] sm:$0xff] }
 0x8de   : > { %5463 = vmatpush1.bf16.msra.mxu1 %v5462_v37  ;;  %4303 = vmatprep.mubr.f32.mxu1 %v5816_v1  ;;  %v5486_v61 = vpack.c.bf16 %v526_v60, %v525_v59 }
 0x8df   : > { %5465 = vmatprep.subr.bf16.mxu1 %v5464_v38 }
 0x8e2   : > { %5467 = vmatpush1.bf16.msra.mxu1 %v5466_v41 }
 0x8e3   : > { %4916 = vmatprep.subr.msk.mxu1 %vm3468_vm15, %v4915_v42 }
 0x8e6   : > { %4917 = vmatpush1.msk.msra.mxu1 %vm3468_vm15, %v4914_v43 }
 0x8e7   : > { %4918 = vmatmul.mubr.msk.f32.vlgmr.msra.gmra.mrb[30].mxu1 %vm3587_vm1, %v6953_v10  ;;  %5477 = vmatprep.subr.bf16.mxu1 %v5476_v46  ;;  %v530_v10 = vld [vmem:[%s7252_s12 + $0x48] sm:$0xff] }
 0x8e8   : > { %5479 = vmatpush3.bf16.msra.mxu1 %v5478_v49  ;;  %v5494_v11 = vpack.c.bf16 %v530_v10, %v529_v9 }
 0x8e9   : > { %5481 = vmatprep.subr.bf16.mxu1 %v5480_v52 }
 0x8ec   : > { %5483 = vmatpush3.bf16.msra.mxu1 %v5482_v55 }
 0x8ed   : > { %5485 = vmatprep.subr.bf16.mxu1 %v5484_v58 }
 0x8f0   : > { %5487 = vmatpush3.bf16.msra.mxu1 %v5486_v61 }
 0x8f1   : > { %5489 = vmatprep.subr.bf16.mxu1 %v5488_v0 }
 0x8f4   : > { %5491 = vmatpush3.bf16.msra.mxu1 %v5490_v4 }
 0x8f5   : > { %5493 = vmatprep.subr.bf16.mxu1 %v5492_v7 }
 0x8f8   : > { %5495 = vmatpush3.bf16.msra.mxu1 %v5494_v11 }
 0x8f9   : > { %5497 = vmatprep.subr.bf16.mxu1 %v5496_v14 }
 0x8fc   : > { %5499 = vmatpush3.bf16.msra.mxu1 %v5498_v17 }
 0x8fd   : > { %5501 = vmatprep.subr.bf16.mxu1 %v5500_v20 }
 0x900   : > { %5503 = vmatpush3.bf16.msra.mxu1 %v5502_v23 }
 0x901   : > { %5505 = vmatprep.subr.bf16.mxu1 %v5504_v27 }
 0x904   : > { %5507 = vmatpush3.bf16.msra.mxu1 %v5506_v29 }
 0x992   : > { %v3770_v32 = vpop.f32.mrb[22].mxu1 }
 0x993   : > { %v3775_v33 = vmul.f32 %v3770_v32, %v7146_v30  ;;  %v3663_v34 = vpop.f32.mrb[20].mxu0  ;;  %v3772_v35 = vpop.f32.mrb[23].mxu1 }
 0x994   : > { %v3668_v36 = vmul.f32 %v3663_v34, %v7146_v30  ;;  %v3776_v37 = vmul.f32 %v3772_v35, %v7151_v31  ;;  %v3665_v38 = vpop.f32.mrb[21].mxu0 }
 0x995   : > { %v3777_v39 = vrot.slane %v3775_v33, 4  ;;  %v3669_v40 = vmul.f32 %v3665_v38, %v7151_v31 }
 0x996   : > { %v3670_v41 = vrot.slane %v3668_v36, 4  ;;  %v3783_v42 = vrot.slane %v3776_v37, 4 }
 0x997   : > { %v3778_v43 = vadd.f32 %v3777_v39, %v3775_v33  ;;  %v3676_v44 = vrot.slane %v3669_v40, 4 }
 0x998   : > { %v3671_v45 = vadd.f32 %v3670_v41, %v3668_v36  ;;  %v3784_v46 = vadd.f32 %v3783_v42, %v3776_v37 }
 0x999   : > { %v3779_v47 = vrot.slane %v3778_v43, 2  ;;  %v3677_v48 = vadd.f32 %v3676_v44, %v3669_v40 }
 0x99a   : > { %v3672_v49 = vrot.slane %v3671_v45, 2  ;;  %v3785_v50 = vrot.slane %v3784_v46, 2 }
 0x99b   : > { %v3780_v51 = vadd.f32 %v3779_v47, %v3778_v43  ;;  %v3678_v52 = vrot.slane %v3677_v48, 2 }
 0x99c   : > { %v3673_v53 = vadd.f32 %v3672_v49, %v3671_v45  ;;  %v3786_v54 = vadd.f32 %v3785_v50, %v3784_v46  ;;  %v3877_v55 = vpop.f32.mrb[24].mxu1 }
 0x99d   : > { %v3781_v56 = vrot.slane %v3780_v51, 1  ;;  %v3679_v57 = vadd.f32 %v3678_v52, %v3677_v48  ;;  %v3882_v58 = vmul.f32 %v3877_v55, %v7146_v30  ;;  %v3879_v59 = vpop.f32.mrb[25].mxu1 }
 0x99e   : > { %v3674_v60 = vrot.slane %v3673_v53, 1  ;;  %v3787_v61 = vrot.slane %v3786_v54, 1  ;;  %v3883_v62 = vmul.f32 %v3879_v59, %v7151_v31  ;;  %v4198_v63 = vpop.f32.mrb[22].mxu0 }
 0x99f   : > { %v3782_v0 = vadd.f32 %v3781_v56, %v3780_v51  ;;  %v3680_v2 = vrot.slane %v3679_v57, 1  ;;  %v3884_v3 = vrot.slane %v3882_v58, 4  ;;  %v4200_v4 = vpop.f32.mrb[23].mxu0  ;;  %v4203_v20 = vmul.f32 %v4198_v63, %v7146_v30 }
 0x9a0   : > { %v3675_v5 = vadd.f32 %v3674_v60, %v3673_v53  ;;  %v3788_v6 = vadd.f32 %v3787_v61, %v3786_v54  ;;  %v3890_v7 = vrot.slane %v3883_v62, 4  ;;  %v4204_v24 = vmul.f32 %v4200_v4, %v7151_v31 }
 0x9a1   : > { %v3681_v9 = vadd.f32 %v3680_v2, %v3679_v57  ;;  %v3885_v10 = vadd.f32 %v3884_v3, %v3882_v58  ;;  %v4205_v35 = vrot.slane %v4203_v20, 4 }
 0x9a2   : > { %v3789_v11 = vadd.f32 %v3782_v0, %v3675_v5  ;;  %v3891_v12 = vadd.f32 %v3890_v7, %v3883_v62  ;;  %v4211_v38 = vrot.slane %v4204_v24, 4 }
 0x9a3   : > { %v3790_v13 = vadd.f32 %v3788_v6, %v3681_v9  ;;  %v3886_v14 = vrot.slane %v3885_v10, 2  ;;  %v4206_v42 = vadd.f32 %v4205_v35, %v4203_v20 }
 0x9a4   : > { %v3892_v15 = vrot.slane %v3891_v12, 2  ;;  %v4212_v44 = vadd.f32 %v4211_v38, %v4204_v24 }
 0x9a5   : > { %v3887_v16 = vadd.f32 %v3886_v14, %v3885_v10  ;;  %v4207_v54 = vrot.slane %v4206_v42, 2 }
 0x9a6   : > { %v3893_v17 = vadd.f32 %v3892_v15, %v3891_v12  ;;  %v3984_v18 = vpop.f32.mrb[26].mxu1  ;;  %v4213_v57 = vrot.slane %v4212_v44, 2 }
 0x9a7   : > { %v3888_v19 = vrot.slane %v3887_v16, 1  ;;  %v3989_v21 = vmul.f32 %v3984_v18, %v7146_v30  ;;  %v3986_v22 = vpop.f32.mrb[27].mxu1  ;;  %v4208_v3 = vadd.f32 %v4207_v54, %v4206_v42 }
 0x9a8   : > { %v3894_v23 = vrot.slane %v3893_v17, 1  ;;  %v3990_v25 = vmul.f32 %v3986_v22, %v7151_v31  ;;  %v4412_v26 = vpop.f32.mrb[24].mxu0  ;;  %v4214_v5 = vadd.f32 %v4213_v57, %v4212_v44 }
 0x9a9   : > { %v3889_v27 = vadd.f32 %v3888_v19, %v3887_v16  ;;  %v3991_v28 = vrot.slane %v3989_v21, 4  ;;  %v4414_v29 = vpop.f32.mrb[25].mxu0  ;;  %v4417_v48 = vmul.f32 %v4412_v26, %v7146_v30 }
 0x9aa   : > { %v3895_v32 = vadd.f32 %v3894_v23, %v3893_v17  ;;  %v3997_v33 = vrot.slane %v3990_v25, 4  ;;  %v4418_v52 = vmul.f32 %v4414_v29, %v7151_v31  ;;  %v4215_v17 = vrot.slane %v4214_v5, 1 }
 0x9ab   : > { %v3896_v34 = vadd.f32 %v3889_v27, %v3789_v11  ;;  %v3992_v36 = vadd.f32 %v3991_v28, %v3989_v21  ;;  %v4419_v61 = vrot.slane %v4417_v48, 4 }
 0x9ac   : > { %v3897_v37 = vadd.f32 %v3895_v32, %v3790_v13  ;;  %v3998_v39 = vadd.f32 %v3997_v33, %v3990_v25  ;;  %v4425_v0 = vrot.slane %v4418_v52, 4  ;;  %v4209_v13 = vrot.slane %v4208_v3, 1 }
 0x9ad   : > { %v3993_v40 = vrot.slane %v3992_v36, 2  ;;  %v4420_v7 = vadd.f32 %v4419_v61, %v4417_v48  ;;  %v4216_v29 = vadd.f32 %v4215_v17, %v4214_v5 }
 0x9ae   : > { %v3999_v41 = vrot.slane %v3998_v39, 2  ;;  %v4426_v10 = vadd.f32 %v4425_v0, %v4418_v52  ;;  %v4210_v26 = vadd.f32 %v4209_v13, %v4208_v3  ;;  %v4505_v52 = vld [vmem:[%s7254_s14] sm:$0xff] }
 0x9af   : > { %v3994_v43 = vadd.f32 %v3993_v40, %v3992_v36  ;;  %v4421_v20 = vrot.slane %v4420_v7, 2 }
 0x9b0   : > { %v4000_v45 = vadd.f32 %v3999_v41, %v3998_v39  ;;  %v4091_v46 = vpop.f32.mrb[28].mxu1  ;;  %v4427_v23 = vrot.slane %v4426_v10, 2 }
 0x9b1   : > { %v3995_v47 = vrot.slane %v3994_v43, 1  ;;  %v4096_v49 = vmul.f32 %v4091_v46, %v7146_v30  ;;  %v4093_v50 = vpop.f32.mrb[29].mxu1 }
 0x9b2   : > { %v4001_v51 = vrot.slane %v4000_v45, 1  ;;  %v4097_v53 = vmul.f32 %v4093_v50, %v7151_v31  ;;  %v4428_v36 = vadd.f32 %v4427_v23, %v4426_v10 }
 0x9b3   : > { %v3996_v55 = vadd.f32 %v3995_v47, %v3994_v43  ;;  %v4098_v56 = vrot.slane %v4096_v49, 4 }
 0x9b4   : > { %v4002_v58 = vadd.f32 %v4001_v51, %v4000_v45  ;;  %v4104_v59 = vrot.slane %v4097_v53, 4  ;;  %v4429_v42 = vrot.slane %v4428_v36, 1 }
 0x9b5   : > { %v4003_v60 = vadd.f32 %v3996_v55, %v3896_v34  ;;  %v4099_v62 = vadd.f32 %v4098_v56, %v4096_v49  ;;  %v4422_v34 = vadd.f32 %v4421_v20, %v4420_v7  ;;  %v4507_v55 = vld [vmem:[%s7254_s14 + $0x10] sm:$0xff]  ;;  %v4508_v56 = vld [vmem:[%s7254_s14 + $0x18] sm:$0xff] }
 0x9b6   : > { %v4004_v63 = vadd.f32 %v4002_v58, %v3897_v37  ;;  %v4105_v2 = vadd.f32 %v4104_v59, %v4097_v53  ;;  %v4430_v49 = vadd.f32 %v4429_v42, %v4428_v36  ;;  %v4506_v53 = vld [vmem:[%s7254_s14 + $0x8] sm:$0xff]  ;;  %v5512_v57 = vpack.c.bf16 %v4508_v56, %v4507_v55  ;;  %v4433_v59 = vld [vmem:[%s7253_s13] sm:$0x1] }
 0x9b7   : > { %v4100_v4 = vrot.slane %v4099_v62, 2  ;;  %v4423_v40 = vrot.slane %v4422_v34, 1  ;;  %v5509_v54 = vpack.c.bf16 %v4506_v53, %v4505_v52 }
 0x9b8   : > { %v4106_v6 = vrot.slane %v4105_v2, 2 }
 0x9b9   : > { %v4101_v9 = vadd.f32 %v4100_v4, %v4099_v62  ;;  %v4424_v46 = vadd.f32 %v4423_v40, %v4422_v34  ;;  %5510 = vmatpush3.bf16.msra.mxu0 %v5509_v54 }
 0x9ba   : > { %v4107_v11 = vadd.f32 %v4106_v6, %v4105_v2  ;;  %v4305_v12 = vpop.f32.mrb[30].mxu1  ;;  %5511 = vmatprep.subr.bf16.mxu0 %v5823_v8 }
 0x9bb   : > { %v4102_v14 = vrot.slane %v4101_v9, 1  ;;  %v4310_v15 = vmul.f32 %v4305_v12, %v7146_v30  ;;  %v4307_v16 = vpop.f32.mrb[31].mxu1 }
 0x9bc   : > { %v4108_v18 = vrot.slane %v4107_v11, 1  ;;  %v4311_v19 = vmul.f32 %v4307_v16, %v7151_v31 }
 0x9bd   : > { %v4103_v21 = vadd.f32 %v4102_v14, %v4101_v9  ;;  %v4312_v22 = vrot.slane %v4310_v15, 4  ;;  %5513 = vmatpush3.bf16.msra.mxu0 %v5512_v57 }
 0x9be   : > { %v4109_v24 = vadd.f32 %v4108_v18, %v4107_v11  ;;  %v4318_v25 = vrot.slane %v4311_v19, 4 }
 0x9bf   : > { %v4110_v27 = vadd.f32 %v4103_v21, %v4003_v60  ;;  %v4313_v28 = vadd.f32 %v4312_v22, %v4310_v15 }
 0x9c0   : > { %v4111_v32 = vadd.f32 %v4109_v24, %v4004_v63  ;;  %v4319_v33 = vadd.f32 %v4318_v25, %v4311_v19  ;;  %v4509_v63 = vld [vmem:[%s7255_s15] sm:$0x1] }
 0x9c1   : > { %v4217_v35 = vadd.f32 %v4210_v26, %v4110_v27  ;;  %v4314_v30 = vrot.slane %v4313_v28, 2 }
 0x9c2   : > { %v4320_v37 = vrot.slane %v4319_v33, 2  ;;  %v4218_v38 = vadd.f32 %v4216_v29, %v4111_v32 }
 0x9c3   : > { %v4315_v39 = vadd.f32 %v4314_v30, %v4313_v28 }
 0x9c4   : > { %v4321_v31 = vadd.f32 %v4320_v37, %v4319_v33 }
 0x9c5   : > { %v4316_v41 = vrot.slane %v4315_v39, 1 }
 0x9c6   : > { %v4322_v43 = vrot.slane %v4321_v31, 1 }
 0x9c7   : > { %v4317_v44 = vadd.f32 %v4316_v41, %v4315_v39 }
 0x9c8   : > { %v4323_v45 = vadd.f32 %v4322_v43, %v4321_v31 }
 0x9c9   : > { %v4324_v47 = vadd.f32 %v4317_v44, %v4217_v35 }
 0x9ca   : > { %v4325_v48 = vadd.f32 %v4323_v45, %v4218_v38 }
 0x9cb   : > { %v4431_v50 = vadd.f32 %v4424_v46, %v4324_v47 }
 0x9cc   : > { %v4432_v51 = vadd.f32 %v4430_v49, %v4325_v48 }
 0x9ce   : > { %4498 = vmatprep.mubr.f32.mxu1 %v4432_v51 }
 0x9cf   : > { %4499 = vmatmul.mubr.f32.vlgmr.msra.gmra.mrb[32].mxu1 %v4431_v50 }
 0xaa2   : > { %v5060_v58 = vpop.f32.mrb[32].mxu1 }
 0xaa3   : > { %v5061_v60 = vpop.f32.mrb[33].mxu1 }
 0xaa4   : > { %v5062_v8 = vadd.f32 %v5061_v60, %v5060_v58 }
 0xaa6   : > { %v4501_v61 = vadd.f32 %v5062_v8, %v4433_v59 }
 0xaa8   : > { %v4504_v62 = vmax.f32 %v4501_v61, 0.0 }
 0xaaa   : > { %5232 = vmatmul.mubr.msk.f32.vlgmr.msra.gmra.mrb[26].mxu0 %vm2597_vm14, %v4504_v62 }
 0xb7d   : > { %v4579_v0 = vpop.f32.mrb[26].mxu0 }
 0xb7e   : > { %v4580_v1 = vadd.f32 %v4579_v0, %v4509_v63  ;;  %v5233_v2 = vpop.f32.mrb[27].mxu0 }
 0xb80   : > { %v4584_v3 = vsel %vm4583_vm3, %v4580_v1, -inf }
 0xb81   : > { %4585 = vmax.xlane.f32.xlu1 %v4584_v3 }
 0xc0e   : > { %v4586_v4 = vpop.xlane.xlu1 %4585 }
 0xc0f   : > { %v4587_v5 = vsub.f32 %v4580_v1, %v4586_v4 }
 0xc11   : > { %v4588_v6 = vmul.f32 1.442695, %v4587_v5 }
 0xc13   : > { %5748 = vpow2.f32 %v4588_v6 }
 0xc1d   : > { %v5749_v7 = vpop.eup %5748 }
 0xc1e   : > { %v4590_v9 = vsel %vm4583_vm3, %v5749_v7, 0.0 }
 0xc1f   : > { %4591 = vadd.xlane.f32.xlu0 %v4590_v9 }
 0xcac   : > { %v4592_v10 = vpop.xlane.xlu0 %4591 }
 0xcad   : > { %5750 = vrcp.f32 %v4592_v10 }
 0xcb7   : > { %v5751_v11 = vpop.eup %5750 }
 0xcb8   : > { %v4594_v12 = vmul.f32 %v5751_v11, %v5749_v7 }
 0xcba   : > { %4595 = vst.msk [vmem:[%s513_s2] sm:$0x1] %vm4583_vm3, %v4594_v12 }
 0xcbb   : > { %5765 = shalt.err (!%p5762_p3)
}
 0xcbc   : > { %s5766_s19 = scalar_lea.hbm %s7197_s28, 16  ;;  %s5770_s2 = scalar_lea.hbm %s7256_s16, 32 }
 0xcbd   : > { %p5767_p4 = scmp.ne.s32.totalorder %s7197_s28, %s5766_s19  ;;  %p5771_p9 = scmp.lt.u32.totalorder %s7197_s28, %s7256_s16 }
 0xcbe   : > { %p5772_p10 = scmp.lt.u32.totalorder %s5770_s2, %s5766_s19  ;;  %p5774_p12 = scmp.lt.u32.totalorder %s5766_s19, %s7197_s28 }
 0xcbf   : > { %p5768_p7 = pnand %p5767_p4, %p5949_p5 }
 0xcc0   : > { %p5773_p11 = por %p5772_p10, %p5771_p9 }
 0xcc1   : > { %p5769_p8 = pneg %p5768_p7 }
 0xcc2   : > { %p5775_p13 = por %p5774_p12, %p5773_p11 }
 0xcc4   : > { %p5776_p0 = pnand %p5775_p13, %p5769_p8 }
 0xcc6   : > { %5779 = shalt.err (!%p5776_p0)
}
 0xcc7   : > { %5607 = dma.vmem_to_hbm [thread:$0]  (%p5949_p5), %s7199_s20, 16, %s7197_s28, %s4597_s30  }
 0xcc8 PF: > { %p5613_p1 = scmp.ge.s32.totalorder %s5814_s24, 2  ;;  %s4621_s23 = sand.u32 1, %s5802_s21  }
 0xcc9   : > { %s4622_s25 = scalar_lea.sflag [#allocation3], %s4621_s23 }
 0xcca   : > { %p5610_p2 = pnand %p5613_p1, %p5953_p6 }
 0xccc   : > { %5797 = dma.done.wait (!%p5610_p2), %s4622_s25, 16  }
 0xccd   : > { %5799 = vsyncadd (!%p5610_p2), %s4622_s25, 4294967280  ;;  %s7285_s24 = sld [smem:[#allocation6_spill]]  ;;  %s7286_s18 = sld [smem:[#allocation5_spill]] }
 0xcce   : > { %s7287_s23 = sld [smem:[#allocation7_spill]]  ;;  %s7288_s21 = smov %s5806_s22 }
 0xcd3   : > { %p26_p3 = scmp.ge.s32.totalorder %s7285_s24, 4   ;;  %s7289_s22 = smov %s7286_s18 }
 0xcd5   :  { %28 = sbr.rel (!%p26_p3) target bundleno = 8 (0x8), region = 138 }
 0xcdc   :  { %4626 = vsyncpa [#allocation3], 1 }
 0xcdd   :  { %4628 = vsyncpa [#allocation3 + $0x1], 1 }

</bundles_post_ra>
